<compile_context>
chip_gen: v7x
topology: tpu7x:2x2x1
jax: 0.10.0
libtpu: 0.0.40
codegen_flags: <defaults>
</compile_context>

<pallas_src>
import functools
import math

import jax
import jax.numpy as jnp
import numpy as np
from jax import lax
from jax.experimental import pallas as pl
from jax.experimental.pallas import tpu as pltpu


def _round_up(x, m):
    return ((x + m - 1) // m) * m


def _egcl_kernel(hc_ref, bd_row_ref, bd_col_ref,
                 ea_lin_ref, inv_deg_ref, plr_ref, gsel_ref,
                 w_src_ref, w_tgt_ref, w_rad_ref, we2_ref, be2_ref,
                 wc1_ref, bc1_ref, wc2r_ref,
                 wn_h_ref, wn_agg_ref, bn1_ref, wn2_ref, bn2_ref,
                 out_ref,
                 *, BT, N, E, F, C, T, coords_weight, act_dtype):
    f32 = jnp.float32
    dot = functools.partial(jnp.dot, preferred_element_type=f32)

    hc3 = hc_ref[...]                              # (BT, N, F+C) f32
    hc2 = hc3.reshape(BT * N, F + C)

    bd_row = bd_row_ref[...]                       # (BT*E, BT*N) f32 0/1, grid-invariant
    bd_col = bd_col_ref[...]

    # --- gathers: two one-hot matmuls over the stacked [h | coord] slab (exact) ---
    g_row = dot(bd_row, hc2)                       # (M, F+C) = [h[row] | coord[row]]
    g_col = dot(bd_col, hc2)                       # (M, F+C) = [h[col] | coord[col]]
    src = g_row[:, :F]
    tgt = g_col[:, :F]
    cdiff = g_row[:, F:] - g_col[:, F:]            # (M, 4T)  computed on the VPU

    # --- coord2radial: fused P_L|P_R selection matmul + Gram selection, f32 norm ---
    lr = dot(cdiff, plr_ref[...])                  # (M, 32T)
    prod = dot(lr[:, :16 * T] * lr[:, 16 * T:], gsel_ref[...])      # (M, 16)
    s = jnp.sum(prod * prod, axis=1, keepdims=True)
    radial = prod * lax.rsqrt(jnp.maximum(s, 1e-24))                # == /max(norm,1e-12)

    # --- edge_mlp: split first layer (no concat), bf16 operands, f32 accumulate ---
    e_lin = (dot(src.astype(act_dtype), w_src_ref[...])
             + dot(tgt.astype(act_dtype), w_tgt_ref[...])
             + dot(radial.astype(act_dtype), w_rad_ref[...]))
    e_lin = e_lin.reshape(BT, E, -1) + ea_lin_ref[...]   # broadcast edge_attr@W + bias
    e1 = jnp.maximum(e_lin, 0.0).reshape(BT * E, -1)
    edge_feat = jnp.maximum(dot(e1.astype(act_dtype), we2_ref[...]) + be2_ref[...], 0.0)

    # --- coord_mlp: per-component broadcast of phi folded into wc2r ---
    c1 = jnp.maximum(dot(edge_feat.astype(act_dtype), wc1_ref[...]) + bc1_ref[...], 0.0)
    phi_rep = dot(c1.astype(act_dtype), wc2r_ref[...])              # (M, 4T)
    trans = cdiff * phi_rep

    # --- segment mean / sum: transposed-LHS contractions (exact f32) ---
    agg_c = lax.dot_general(bd_row, trans, (((0,), (0,)), ((), ())),
                            preferred_element_type=f32)             # (BT*N, 4T)
    agg_h = lax.dot_general(bd_row, edge_feat, (((0,), (0,)), ((), ())),
                            preferred_element_type=f32)             # (BT*N, H)

    c_out = hc3[:, :, F:] + coords_weight * (
        agg_c.reshape(BT, N, C) * inv_deg_ref[...][None])           # (BT, N, 4T)

    # --- node_model: split first layer + residual (f32 residual add) ---
    h2 = hc2[:, :F]
    n_lin = (dot(h2.astype(act_dtype), wn_h_ref[...])
             + dot(agg_h.astype(act_dtype), wn_agg_ref[...]) + bn1_ref[...])
    n1 = jnp.maximum(n_lin, 0.0)
    h_out = h2 + dot(n1.astype(act_dtype), wn2_ref[...]) + bn2_ref[...]

    # --- lane-dense output slab: direct slice stores, pad lanes never read ---
    out_ref[:, :, 0:F] = h_out.reshape(BT, N, F)
    out_ref[:, :, F:F + C] = c_out


def e_gcl_x_forward(h, coord, edge_index, edge_attr, params,
                    coords_weight=1.0, graphs_per_step=None,
                    mlp_dtype=jnp.bfloat16):
    h = jnp.asarray(h, jnp.float32)
    coord = jnp.asarray(coord, jnp.float32)
    B, N, F = h.shape
    assert coord.shape[:3] == (B, N, 4)
    T = coord.shape[3]
    C = 4 * T

    row, col = edge_index
    row = np.asarray(row)
    col = np.asarray(col)
    E = int(row.shape[0])

    # --- batch tile: fill MXU contraction depth (K = BT*N ~ 128) but keep >= 2
    #     grid steps so the parallel axis shards across TCs and pipelines. ---
    if graphs_per_step is None:
        BT = max(1, -(-128 // max(N, 1)))          # BT*N >= 128
        if B >= 2:
            BT = min(BT, max(1, B // 2))
    else:
        BT = int(graphs_per_step)
    BT = max(1, min(BT, B))

    coord_flat = coord.reshape(B, N, C)
    hc = jnp.concatenate([h, coord_flat], axis=-1)          # [B, N, F+C]
    B_pad = _round_up(B, BT)
    if B_pad != B:
        hc = jnp.concatenate(
            [hc, jnp.zeros((B_pad - B, N, F + C), hc.dtype)], axis=0)
    num_tiles = B_pad // BT

    # --- batch-invariant block-diagonal one-hot matrices (f32, DMA'd once) ---
    s_row = np.zeros((E, N), np.float32)
    s_row[np.arange(E), row] = 1.0
    s_col = np.zeros((E, N), np.float32)
    s_col[np.arange(E), col] = 1.0

    def blockdiag(S):
        out = np.zeros((BT * E, BT * N), np.float32)
        for b in range(BT):
            out[b * E:(b + 1) * E, b * N:(b + 1) * N] = S
        return jnp.asarray(out)

    bd_row = blockdiag(s_row)
    bd_col = blockdiag(s_col)

    # 1 / clamp(degree, 1)  (per-node, broadcast in-kernel; no BT pre-tiling)
    deg = np.zeros((N,), np.float32)
    np.add.at(deg, row, 1.0)
    inv_deg = jnp.asarray((1.0 / np.maximum(deg, 1.0)).reshape(N, 1), jnp.float32)

    # Gram-matrix helper constants: prod = ((cdiff @ P_L) * (cdiff @ P_R)) @ G
    # with P_L|P_R fused into one selection matmul.
    P_L = np.zeros((C, 16 * T), np.float32)
    P_R = np.zeros((C, 16 * T), np.float32)
    G = np.zeros((16 * T, 16), np.float32)
    for j in range(4):
        for k in range(4):
            c = 4 * j + k
            for t in range(T):
                P_L[j * T + t, c * T + t] = 1.0
                P_R[k * T + t, c * T + t] = 1.0
                G[c * T + t, c] = 1.0
    PLR = jnp.asarray(np.concatenate([P_L, P_R], axis=1), jnp.float32)   # [C, 32T]
    G = jnp.asarray(G, jnp.float32)

    (we1, be1), (we2, be2) = params['edge1'], params['edge2']
    (wc1, bc1), wc2 = params['coord1'], params['coord2']
    (wn1, bn1), (wn2, bn2) = params['node1'], params['node2']
    H = int(we2.shape[1])

    # Split first-layer weights (no in-kernel concat); MLP weights in mlp_dtype.
    w_src = we1[:F].astype(mlp_dtype)
    w_tgt = we1[F:2 * F].astype(mlp_dtype)
    w_rad = we1[2 * F:2 * F + 16].astype(mlp_dtype)
    w_ea = we1[2 * F + 16:]
    if edge_attr is None:
        ea_lin = jnp.broadcast_to(be1, (E, H)).astype(jnp.float32)
    else:
        ea_lin = (jnp.dot(jnp.asarray(edge_attr, jnp.float32), w_ea,
                          precision=lax.Precision.HIGHEST) + be1)        # [E, H] f32

    wn_h = wn1[:F].astype(mlp_dtype)
    wn_agg = wn1[F:].astype(mlp_dtype)

    # Fold phi's per-component broadcast into the coord head: wc2 @ R.
    R = np.zeros((4, C), np.float32)
    for j in range(4):
        R[j, j * T:(j + 1) * T] = 1.0
    wc2r = jnp.dot(wc2, jnp.asarray(R),
                   precision=lax.Precision.HIGHEST).astype(mlp_dtype)    # [H, 4T]

    we2_c = we2.astype(mlp_dtype)
    wc1_c = wc1.astype(mlp_dtype)
    wn2_c = wn2.astype(mlp_dtype)

    out_pad = _round_up(F + C, 128)

    shared_arrays = (bd_row, bd_col, ea_lin, inv_deg, PLR, G,
                     w_src, w_tgt, w_rad, we2_c, be2,
                     wc1_c, bc1, wc2r,
                     wn_h, wn_agg, bn1, wn2_c, bn2)

    def shared_spec(shape):
        rank = len(shape)
        return pl.BlockSpec(tuple(shape), lambda b, _r=rank: (0,) * _r)

    in_specs = [pl.BlockSpec((BT, N, F + C), lambda b: (b, 0, 0))] + \
               [shared_spec(a.shape) for a in shared_arrays]

    kernel = functools.partial(
        _egcl_kernel, BT=BT, N=N, E=E, F=F, C=C, T=T,
        coords_weight=float(coords_weight), act_dtype=mlp_dtype)

    out = pl.pallas_call(
        kernel,
        out_shape=jax.ShapeDtypeStruct((B_pad, N, out_pad), jnp.float32),
        grid_spec=pltpu.PrefetchScalarGridSpec(
            num_scalar_prefetch=0,
            grid=(num_tiles,),
            in_specs=in_specs,
            out_specs=pl.BlockSpec((BT, N, out_pad), lambda b: (b, 0, 0))),
        compiler_params=pltpu.CompilerParams(
            dimension_semantics=("parallel",),
            vmem_limit_bytes=48 * 1024 * 1024),
    )(hc, *shared_arrays)

    hs = out[:B, :, :F]
    coords = out[:B, :, F:F + C].reshape(B, N, 4, T)
    return hs, coords


def make_params(key, input_nf, output_nf, hidden_nf, edges_in_d):
    """Deterministic parameter init matching the shapes in E_GCL_X.__init__."""
    def linear(k, fi, fo, bias=True, xavier_gain=None):
        kw, kb = jax.random.split(k)
        if xavier_gain is not None:
            bound = xavier_gain * math.sqrt(6.0 / (fi + fo))
        else:
            bound = 1.0 / math.sqrt(fi)
        W = jax.random.uniform(kw, (fi, fo), jnp.float32, -bound, bound)
        if not bias:
            return W
        b = jax.random.uniform(kb, (1, fo), jnp.float32, -bound, bound)
        return W, b

    ks = jax.random.split(key, 6)
    input_edge = 2 * input_nf
    edge_coords_nf = 4 * 4
    return {
        'edge1': linear(ks[0], input_edge + edge_coords_nf + edges_in_d, hidden_nf),
        'edge2': linear(ks[1], hidden_nf, hidden_nf),
        'node1': linear(ks[2], hidden_nf + input_nf, hidden_nf),
        'node2': linear(ks[3], hidden_nf, output_nf),
        'coord1': linear(ks[4], hidden_nf, hidden_nf),
        'coord2': linear(ks[5], hidden_nf, 4, bias=False, xavier_gain=0.001),
    }
    # TODO(synk): adj_mlp / coord_mlp_pos / att_mlp exist in __init__ but are
    # unused by forward() (attention=False, tanh=False); node_attr (Fs) is None.


def ref_forward(h, coord, edge_index, edge_attr, params, coords_weight=1.0):
    """Pure-JAX reference mirroring the PyTorch forward."""
    row, col = edge_index
    row = jnp.asarray(row)
    col = jnp.asarray(col)
    (we1, be1), (we2, be2) = params['edge1'], params['edge2']
    (wc1, bc1), wc2 = params['coord1'], params['coord2']
    (wn1, bn1), (wn2, bn2) = params['node1'], params['node2']
    N = h.shape[1]

    def one(hb, cb):
        cdiff = cb[row] - cb[col]                              # [E, 4, T]
        E = cdiff.shape[0]
        prod = jnp.einsum('ejt,ekt->ejk', cdiff, cdiff).reshape(E, 16)
        norm = jnp.sqrt(jnp.sum(prod * prod, axis=-1, keepdims=True))
        radial = prod / jnp.maximum(norm, 1e-12)
        ein = jnp.concatenate([hb[row], hb[col], radial, edge_attr], axis=1)
        e1 = jax.nn.relu(ein @ we1 + be1)
        ef = jax.nn.relu(e1 @ we2 + be2)
        c1 = jax.nn.relu(ef @ wc1 + bc1)
        phi = c1 @ wc2
        trans = cdiff * phi[:, :, None]
        summed = jnp.zeros_like(cb).at[row].add(trans)
        cnt = jnp.zeros_like(cb).at[row].add(jnp.ones_like(trans))
        aggc = summed / jnp.maximum(cnt, 1.0)
        c_new = cb + coords_weight * aggc
        aggh = jnp.zeros((N, ef.shape[1]), jnp.float32).at[row].add(ef)
        nin = jnp.concatenate([hb, aggh], axis=1)
        n1 = jax.nn.relu(nin @ wn1 + bn1)
        out = n1 @ wn2 + bn2
        return hb + out, c_new

    return jax.vmap(one)(h, coord)


if __name__ == "__main__":
    B, N = 4, 8          # batch of graphs, nodes per graph
    F = 32               # input_nf == output_nf (recurrent residual)
    H = 32               # hidden_nf
    De = 4               # edges_in_d
    T = 3                # coord is [N, 4, T]

    key = jax.random.PRNGKey(0)
    kh, kc, ke, kp = jax.random.split(key, 4)
    h = jax.random.normal(kh, (B, N, F), jnp.float32)
    coord = jax.random.normal(kc, (B, N, 4, T), jnp.float32)

    # fully-connected edges without self loops (shared across batch, like PyTorch)
    row = jnp.array([i for i in range(N) for j in range(N) if i != j], jnp.int32)
    col = jnp.array([j for i in range(N) for j in range(N) if i != j], jnp.int32)
    edge_index = (row, col)
    E = row.shape[0]
    edge_attr = jax.random.normal(ke, (E, De), jnp.float32)

    params = make_params(kp, F, F, H, De)

    hs, coords = e_gcl_x_forward(h, coord, edge_index, edge_attr, params)
    jax.block_until_ready((hs, coords))

    hs_ref, coords_ref = ref_forward(h, coord, edge_index, edge_attr, params)
    jax.block_until_ready((hs_ref, coords_ref))

    assert hs.shape == (B, N, F) and coords.shape == (B, N, 4, T)
    # Tolerance accounts for bf16 MLP operands (f32 accumulation / residuals).
    assert jnp.allclose(hs, hs_ref, rtol=3e-2, atol=3e-2), "h mismatch"
    assert jnp.allclose(coords, coords_ref, rtol=3e-2, atol=3e-2), "coord mismatch"
    print("KERNEL_OK")
</pallas_src>

<mosaic_0001>
module attributes {stable_mosaic.version = 11 : i64} {
  func.func @_egcl_kernel(%arg0: i32, %arg1: memref<2x8x44xf32, #tpu.memory_space<vmem>>, %arg2: memref<112x16xf32, #tpu.memory_space<vmem>>, %arg3: memref<112x16xf32, #tpu.memory_space<vmem>>, %arg4: memref<56x32xf32, #tpu.memory_space<vmem>>, %arg5: memref<8x1xf32, #tpu.memory_space<vmem>>, %arg6: memref<12x96xf32, #tpu.memory_space<vmem>>, %arg7: memref<48x16xf32, #tpu.memory_space<vmem>>, %arg8: memref<32x32xbf16, #tpu.memory_space<vmem>>, %arg9: memref<32x32xbf16, #tpu.memory_space<vmem>>, %arg10: memref<16x32xbf16, #tpu.memory_space<vmem>>, %arg11: memref<32x32xbf16, #tpu.memory_space<vmem>>, %arg12: memref<1x32xf32, #tpu.memory_space<vmem>>, %arg13: memref<32x32xbf16, #tpu.memory_space<vmem>>, %arg14: memref<1x32xf32, #tpu.memory_space<vmem>>, %arg15: memref<32x12xbf16, #tpu.memory_space<vmem>>, %arg16: memref<32x32xbf16, #tpu.memory_space<vmem>>, %arg17: memref<32x32xbf16, #tpu.memory_space<vmem>>, %arg18: memref<1x32xf32, #tpu.memory_space<vmem>>, %arg19: memref<32x32xbf16, #tpu.memory_space<vmem>>, %arg20: memref<1x32xf32, #tpu.memory_space<vmem>>, %arg21: memref<2x8x128xf32, #tpu.memory_space<vmem>>) attributes {dimension_semantics = [#tpu.dimension_semantics<parallel>], iteration_bounds = array<i64: 2>, scalar_prefetch = 0 : i64, scratch_operands = 0 : i64, tpu.core_type = #tpu.core_type<tc>, window_params = [{transform_indices = @transform_0, window_bounds = array<i64: 2, 8, 44>}, {pipeline_mode = #tpu.pipeline_mode<synchronous>, transform_indices = @transform_1, window_bounds = array<i64: 112, 16>}, {pipeline_mode = #tpu.pipeline_mode<synchronous>, transform_indices = @transform_2, window_bounds = array<i64: 112, 16>}, {pipeline_mode = #tpu.pipeline_mode<synchronous>, transform_indices = @transform_3, window_bounds = array<i64: 56, 32>}, {pipeline_mode = #tpu.pipeline_mode<synchronous>, transform_indices = @transform_4, window_bounds = array<i64: 8, 1>}, {pipeline_mode = #tpu.pipeline_mode<synchronous>, transform_indices = @transform_5, window_bounds = array<i64: 12, 96>}, {pipeline_mode = #tpu.pipeline_mode<synchronous>, transform_indices = @transform_6, window_bounds = array<i64: 48, 16>}, {pipeline_mode = #tpu.pipeline_mode<synchronous>, transform_indices = @transform_7, window_bounds = array<i64: 32, 32>}, {pipeline_mode = #tpu.pipeline_mode<synchronous>, transform_indices = @transform_8, window_bounds = array<i64: 32, 32>}, {pipeline_mode = #tpu.pipeline_mode<synchronous>, transform_indices = @transform_9, window_bounds = array<i64: 16, 32>}, {pipeline_mode = #tpu.pipeline_mode<synchronous>, transform_indices = @transform_10, window_bounds = array<i64: 32, 32>}, {pipeline_mode = #tpu.pipeline_mode<synchronous>, transform_indices = @transform_11, window_bounds = array<i64: 1, 32>}, {pipeline_mode = #tpu.pipeline_mode<synchronous>, transform_indices = @transform_12, window_bounds = array<i64: 32, 32>}, {pipeline_mode = #tpu.pipeline_mode<synchronous>, transform_indices = @transform_13, window_bounds = array<i64: 1, 32>}, {pipeline_mode = #tpu.pipeline_mode<synchronous>, transform_indices = @transform_14, window_bounds = array<i64: 32, 12>}, {pipeline_mode = #tpu.pipeline_mode<synchronous>, transform_indices = @transform_15, window_bounds = array<i64: 32, 32>}, {pipeline_mode = #tpu.pipeline_mode<synchronous>, transform_indices = @transform_16, window_bounds = array<i64: 32, 32>}, {pipeline_mode = #tpu.pipeline_mode<synchronous>, transform_indices = @transform_17, window_bounds = array<i64: 1, 32>}, {pipeline_mode = #tpu.pipeline_mode<synchronous>, transform_indices = @transform_18, window_bounds = array<i64: 32, 32>}, {pipeline_mode = #tpu.pipeline_mode<synchronous>, transform_indices = @transform_19, window_bounds = array<i64: 1, 32>}, {transform_indices = @transform_20, window_bounds = array<i64: 2, 8, 128>}]} {
    %c0 = arith.constant 0 : index
    %c0_0 = arith.constant 0 : index
    %c0_1 = arith.constant 0 : index
    %0 = vector.load %arg1[%c0, %c0_0, %c0_1] : memref<2x8x44xf32, #tpu.memory_space<vmem>>, vector<2x8x44xf32>
    %1 = vector.shape_cast %0 : vector<2x8x44xf32> to vector<16x44xf32>
    %c0_2 = arith.constant 0 : index
    %c0_3 = arith.constant 0 : index
    %2 = vector.load %arg2[%c0_2, %c0_3] : memref<112x16xf32, #tpu.memory_space<vmem>>, vector<112x16xf32>
    %c0_4 = arith.constant 0 : index
    %c0_5 = arith.constant 0 : index
    %3 = vector.load %arg3[%c0_4, %c0_5] : memref<112x16xf32, #tpu.memory_space<vmem>>, vector<112x16xf32>
    %cst = arith.constant dense<0.000000e+00> : vector<112x44xf32>
    %4 = tpu.matmul %2, %1, %cst {dimension_numbers = #tpu.dot_dimension_numbers<[1], [0], [0], [1], [0, 0, 1, 1], [], []>} : vector<112x16xf32>, vector<16x44xf32>, vector<112x44xf32> -> vector<112x44xf32>
    %cst_6 = arith.constant dense<0.000000e+00> : vector<112x44xf32>
    %5 = tpu.matmul %3, %1, %cst_6 {dimension_numbers = #tpu.dot_dimension_numbers<[1], [0], [0], [1], [0, 0, 1, 1], [], []>} : vector<112x16xf32>, vector<16x44xf32>, vector<112x44xf32> -> vector<112x44xf32>
    %6 = vector.extract_strided_slice %4 {offsets = [0, 0], sizes = [112, 32], strides = [1, 1]} : vector<112x44xf32> to vector<112x32xf32>
    %7 = vector.extract_strided_slice %5 {offsets = [0, 0], sizes = [112, 32], strides = [1, 1]} : vector<112x44xf32> to vector<112x32xf32>
    %8 = vector.extract_strided_slice %4 {offsets = [0, 32], sizes = [112, 12], strides = [1, 1]} : vector<112x44xf32> to vector<112x12xf32>
    %9 = vector.extract_strided_slice %5 {offsets = [0, 32], sizes = [112, 12], strides = [1, 1]} : vector<112x44xf32> to vector<112x12xf32>
    %10 = arith.subf %8, %9 : vector<112x12xf32>
    %c0_7 = arith.constant 0 : index
    %c0_8 = arith.constant 0 : index
    %11 = vector.load %arg6[%c0_7, %c0_8] : memref<12x96xf32, #tpu.memory_space<vmem>>, vector<12x96xf32>
    %cst_9 = arith.constant dense<0.000000e+00> : vector<112x96xf32>
    %12 = tpu.matmul %10, %11, %cst_9 {dimension_numbers = #tpu.dot_dimension_numbers<[1], [0], [0], [1], [0, 0, 1, 1], [], []>} : vector<112x12xf32>, vector<12x96xf32>, vector<112x96xf32> -> vector<112x96xf32>
    %13 = vector.extract_strided_slice %12 {offsets = [0, 0], sizes = [112, 48], strides = [1, 1]} : vector<112x96xf32> to vector<112x48xf32>
    %14 = vector.extract_strided_slice %12 {offsets = [0, 48], sizes = [112, 48], strides = [1, 1]} : vector<112x96xf32> to vector<112x48xf32>
    %15 = arith.mulf %13, %14 : vector<112x48xf32>
    %c0_10 = arith.constant 0 : index
    %c0_11 = arith.constant 0 : index
    %16 = vector.load %arg7[%c0_10, %c0_11] : memref<48x16xf32, #tpu.memory_space<vmem>>, vector<48x16xf32>
    %cst_12 = arith.constant dense<0.000000e+00> : vector<112x16xf32>
    %17 = tpu.matmul %15, %16, %cst_12 {dimension_numbers = #tpu.dot_dimension_numbers<[1], [0], [0], [1], [0, 0, 1, 1], [], []>} : vector<112x48xf32>, vector<48x16xf32>, vector<112x16xf32> -> vector<112x16xf32>
    %18 = arith.mulf %17, %17 : vector<112x16xf32>
    %cst_13 = arith.constant dense<0.000000e+00> : vector<112xf32>
    %19 = vector.multi_reduction <add>, %18, %cst_13 [1] : vector<112x16xf32> to vector<112xf32>
    %20 = vector.shape_cast %19 : vector<112xf32> to vector<112x1xf32>
    %cst_14 = arith.constant 1.000000e-24 : f32
    %21 = vector.broadcast %cst_14 : f32 to vector<112x1xf32>
    %22 = arith.maximumf %20, %21 : vector<112x1xf32>
    %23 = math.rsqrt %22 : vector<112x1xf32>
    %24 = vector.broadcast %23 : vector<112x1xf32> to vector<112x16xf32>
    %25 = arith.mulf %17, %24 : vector<112x16xf32>
    %26 = arith.truncf %6 : vector<112x32xf32> to vector<112x32xbf16>
    %c0_15 = arith.constant 0 : index
    %c0_16 = arith.constant 0 : index
    %27 = vector.load %arg8[%c0_15, %c0_16] : memref<32x32xbf16, #tpu.memory_space<vmem>>, vector<32x32xbf16>
    %cst_17 = arith.constant dense<0.000000e+00> : vector<112x32xf32>
    %28 = tpu.matmul %26, %27, %cst_17 {dimension_numbers = #tpu.dot_dimension_numbers<[1], [0], [0], [1], [0, 0, 1, 1], [], []>} : vector<112x32xbf16>, vector<32x32xbf16>, vector<112x32xf32> -> vector<112x32xf32>
    %29 = arith.truncf %7 : vector<112x32xf32> to vector<112x32xbf16>
    %c0_18 = arith.constant 0 : index
    %c0_19 = arith.constant 0 : index
    %30 = vector.load %arg9[%c0_18, %c0_19] : memref<32x32xbf16, #tpu.memory_space<vmem>>, vector<32x32xbf16>
    %cst_20 = arith.constant dense<0.000000e+00> : vector<112x32xf32>
    %31 = tpu.matmul %29, %30, %cst_20 {dimension_numbers = #tpu.dot_dimension_numbers<[1], [0], [0], [1], [0, 0, 1, 1], [], []>} : vector<112x32xbf16>, vector<32x32xbf16>, vector<112x32xf32> -> vector<112x32xf32>
    %32 = arith.addf %28, %31 : vector<112x32xf32>
    %33 = arith.truncf %25 : vector<112x16xf32> to vector<112x16xbf16>
    %c0_21 = arith.constant 0 : index
    %c0_22 = arith.constant 0 : index
    %34 = vector.load %arg10[%c0_21, %c0_22] : memref<16x32xbf16, #tpu.memory_space<vmem>>, vector<16x32xbf16>
    %cst_23 = arith.constant dense<0.000000e+00> : vector<112x32xf32>
    %35 = tpu.matmul %33, %34, %cst_23 {dimension_numbers = #tpu.dot_dimension_numbers<[1], [0], [0], [1], [0, 0, 1, 1], [], []>} : vector<112x16xbf16>, vector<16x32xbf16>, vector<112x32xf32> -> vector<112x32xf32>
    %36 = arith.addf %32, %35 : vector<112x32xf32>
    %37 = vector.shape_cast %36 : vector<112x32xf32> to vector<2x56x32xf32>
    %c0_24 = arith.constant 0 : index
    %c0_25 = arith.constant 0 : index
    %38 = vector.load %arg4[%c0_24, %c0_25] : memref<56x32xf32, #tpu.memory_space<vmem>>, vector<56x32xf32>
    %39 = vector.shape_cast %38 : vector<56x32xf32> to vector<1x56x32xf32>
    %40 = vector.broadcast %39 : vector<1x56x32xf32> to vector<2x56x32xf32>
    %41 = arith.addf %37, %40 : vector<2x56x32xf32>
    %cst_26 = arith.constant 0.000000e+00 : f32
    %42 = vector.broadcast %cst_26 : f32 to vector<2x56x32xf32>
    %43 = arith.maximumf %41, %42 : vector<2x56x32xf32>
    %44 = vector.shape_cast %43 : vector<2x56x32xf32> to vector<112x32xf32>
    %45 = arith.truncf %44 : vector<112x32xf32> to vector<112x32xbf16>
    %c0_27 = arith.constant 0 : index
    %c0_28 = arith.constant 0 : index
    %46 = vector.load %arg11[%c0_27, %c0_28] : memref<32x32xbf16, #tpu.memory_space<vmem>>, vector<32x32xbf16>
    %cst_29 = arith.constant dense<0.000000e+00> : vector<112x32xf32>
    %47 = tpu.matmul %45, %46, %cst_29 {dimension_numbers = #tpu.dot_dimension_numbers<[1], [0], [0], [1], [0, 0, 1, 1], [], []>} : vector<112x32xbf16>, vector<32x32xbf16>, vector<112x32xf32> -> vector<112x32xf32>
    %c0_30 = arith.constant 0 : index
    %c0_31 = arith.constant 0 : index
    %48 = vector.load %arg12[%c0_30, %c0_31] : memref<1x32xf32, #tpu.memory_space<vmem>>, vector<1x32xf32>
    %49 = vector.broadcast %48 : vector<1x32xf32> to vector<112x32xf32>
    %50 = arith.addf %47, %49 : vector<112x32xf32>
    %cst_32 = arith.constant 0.000000e+00 : f32
    %51 = vector.broadcast %cst_32 : f32 to vector<112x32xf32>
    %52 = arith.maximumf %50, %51 : vector<112x32xf32>
    %53 = arith.truncf %52 : vector<112x32xf32> to vector<112x32xbf16>
    %c0_33 = arith.constant 0 : index
    %c0_34 = arith.constant 0 : index
    %54 = vector.load %arg13[%c0_33, %c0_34] : memref<32x32xbf16, #tpu.memory_space<vmem>>, vector<32x32xbf16>
    %cst_35 = arith.constant dense<0.000000e+00> : vector<112x32xf32>
    %55 = tpu.matmul %53, %54, %cst_35 {dimension_numbers = #tpu.dot_dimension_numbers<[1], [0], [0], [1], [0, 0, 1, 1], [], []>} : vector<112x32xbf16>, vector<32x32xbf16>, vector<112x32xf32> -> vector<112x32xf32>
    %c0_36 = arith.constant 0 : index
    %c0_37 = arith.constant 0 : index
    %56 = vector.load %arg14[%c0_36, %c0_37] : memref<1x32xf32, #tpu.memory_space<vmem>>, vector<1x32xf32>
    %57 = vector.broadcast %56 : vector<1x32xf32> to vector<112x32xf32>
    %58 = arith.addf %55, %57 : vector<112x32xf32>
    %cst_38 = arith.constant 0.000000e+00 : f32
    %59 = vector.broadcast %cst_38 : f32 to vector<112x32xf32>
    %60 = arith.maximumf %58, %59 : vector<112x32xf32>
    %61 = arith.truncf %60 : vector<112x32xf32> to vector<112x32xbf16>
    %c0_39 = arith.constant 0 : index
    %c0_40 = arith.constant 0 : index
    %62 = vector.load %arg15[%c0_39, %c0_40] : memref<32x12xbf16, #tpu.memory_space<vmem>>, vector<32x12xbf16>
    %cst_41 = arith.constant dense<0.000000e+00> : vector<112x12xf32>
    %63 = tpu.matmul %61, %62, %cst_41 {dimension_numbers = #tpu.dot_dimension_numbers<[1], [0], [0], [1], [0, 0, 1, 1], [], []>} : vector<112x32xbf16>, vector<32x12xbf16>, vector<112x12xf32> -> vector<112x12xf32>
    %64 = arith.mulf %10, %63 : vector<112x12xf32>
    %cst_42 = arith.constant dense<0.000000e+00> : vector<16x12xf32>
    %65 = tpu.matmul %2, %64, %cst_42 {dimension_numbers = #tpu.dot_dimension_numbers<[0], [0], [1], [1], [0, 1, 1, 1], [], []>} : vector<112x16xf32>, vector<112x12xf32>, vector<16x12xf32> -> vector<16x12xf32>
    %cst_43 = arith.constant dense<0.000000e+00> : vector<16x32xf32>
    %66 = tpu.matmul %2, %52, %cst_43 {dimension_numbers = #tpu.dot_dimension_numbers<[0], [0], [1], [1], [0, 1, 1, 1], [], []>} : vector<112x16xf32>, vector<112x32xf32>, vector<16x32xf32> -> vector<16x32xf32>
    %67 = vector.extract_strided_slice %0 {offsets = [0, 0, 32], sizes = [2, 8, 12], strides = [1, 1, 1]} : vector<2x8x44xf32> to vector<2x8x12xf32>
    %68 = vector.shape_cast %65 : vector<16x12xf32> to vector<2x8x12xf32>
    %c0_44 = arith.constant 0 : index
    %c0_45 = arith.constant 0 : index
    %69 = vector.load %arg5[%c0_44, %c0_45] : memref<8x1xf32, #tpu.memory_space<vmem>>, vector<8x1xf32>
    %70 = vector.shape_cast %69 : vector<8x1xf32> to vector<1x8x1xf32>
    %71 = vector.broadcast %70 : vector<1x8x1xf32> to vector<2x8x12xf32>
    %72 = arith.mulf %68, %71 : vector<2x8x12xf32>
    %cst_46 = arith.constant 1.000000e+00 : f32
    %73 = vector.broadcast %cst_46 : f32 to vector<2x8x12xf32>
    %74 = arith.mulf %73, %72 : vector<2x8x12xf32>
    %75 = arith.addf %67, %74 : vector<2x8x12xf32>
    %76 = vector.extract_strided_slice %1 {offsets = [0, 0], sizes = [16, 32], strides = [1, 1]} : vector<16x44xf32> to vector<16x32xf32>
    %77 = arith.truncf %76 : vector<16x32xf32> to vector<16x32xbf16>
    %c0_47 = arith.constant 0 : index
    %c0_48 = arith.constant 0 : index
    %78 = vector.load %arg16[%c0_47, %c0_48] : memref<32x32xbf16, #tpu.memory_space<vmem>>, vector<32x32xbf16>
    %cst_49 = arith.constant dense<0.000000e+00> : vector<16x32xf32>
    %79 = tpu.matmul %77, %78, %cst_49 {dimension_numbers = #tpu.dot_dimension_numbers<[1], [0], [0], [1], [0, 0, 1, 1], [], []>} : vector<16x32xbf16>, vector<32x32xbf16>, vector<16x32xf32> -> vector<16x32xf32>
    %80 = arith.truncf %66 : vector<16x32xf32> to vector<16x32xbf16>
    %c0_50 = arith.constant 0 : index
    %c0_51 = arith.constant 0 : index
    %81 = vector.load %arg17[%c0_50, %c0_51] : memref<32x32xbf16, #tpu.memory_space<vmem>>, vector<32x32xbf16>
    %cst_52 = arith.constant dense<0.000000e+00> : vector<16x32xf32>
    %82 = tpu.matmul %80, %81, %cst_52 {dimension_numbers = #tpu.dot_dimension_numbers<[1], [0], [0], [1], [0, 0, 1, 1], [], []>} : vector<16x32xbf16>, vector<32x32xbf16>, vector<16x32xf32> -> vector<16x32xf32>
    %83 = arith.addf %79, %82 : vector<16x32xf32>
    %c0_53 = arith.constant 0 : index
    %c0_54 = arith.constant 0 : index
    %84 = vector.load %arg18[%c0_53, %c0_54] : memref<1x32xf32, #tpu.memory_space<vmem>>, vector<1x32xf32>
    %85 = vector.broadcast %84 : vector<1x32xf32> to vector<16x32xf32>
    %86 = arith.addf %83, %85 : vector<16x32xf32>
    %cst_55 = arith.constant 0.000000e+00 : f32
    %87 = vector.broadcast %cst_55 : f32 to vector<16x32xf32>
    %88 = arith.maximumf %86, %87 : vector<16x32xf32>
    %89 = arith.truncf %88 : vector<16x32xf32> to vector<16x32xbf16>
    %c0_56 = arith.constant 0 : index
    %c0_57 = arith.constant 0 : index
    %90 = vector.load %arg19[%c0_56, %c0_57] : memref<32x32xbf16, #tpu.memory_space<vmem>>, vector<32x32xbf16>
    %cst_58 = arith.constant dense<0.000000e+00> : vector<16x32xf32>
    %91 = tpu.matmul %89, %90, %cst_58 {dimension_numbers = #tpu.dot_dimension_numbers<[1], [0], [0], [1], [0, 0, 1, 1], [], []>} : vector<16x32xbf16>, vector<32x32xbf16>, vector<16x32xf32> -> vector<16x32xf32>
    %92 = arith.addf %76, %91 : vector<16x32xf32>
    %c0_59 = arith.constant 0 : index
    %c0_60 = arith.constant 0 : index
    %93 = vector.load %arg20[%c0_59, %c0_60] : memref<1x32xf32, #tpu.memory_space<vmem>>, vector<1x32xf32>
    %94 = vector.broadcast %93 : vector<1x32xf32> to vector<16x32xf32>
    %95 = arith.addf %92, %94 : vector<16x32xf32>
    %96 = vector.shape_cast %95 : vector<16x32xf32> to vector<2x8x32xf32>
    %c0_61 = arith.constant 0 : index
    %c0_62 = arith.constant 0 : index
    %c0_63 = arith.constant 0 : index
    %97 = vector.load %arg21[%c0_61, %c0_62, %c0_63] : memref<2x8x128xf32, #tpu.memory_space<vmem>>, vector<2x8x32xf32>
    tpu.vector_store %arg21[%c0_61, %c0_62, %c0_63], %96 {strides = array<i32>} : memref<2x8x128xf32, #tpu.memory_space<vmem>>, vector<2x8x32xf32>,
    %c0_64 = arith.constant 0 : index
    %c0_65 = arith.constant 0 : index
    %c32 = arith.constant 32 : index
    %98 = vector.load %arg21[%c0_64, %c0_65, %c32] : memref<2x8x128xf32, #tpu.memory_space<vmem>>, vector<2x8x12xf32>
    tpu.vector_store %arg21[%c0_64, %c0_65, %c32], %75 {strides = array<i32>} : memref<2x8x128xf32, #tpu.memory_space<vmem>>, vector<2x8x12xf32>,
    return
  }
  func.func @transform_0(%arg0: i32) -> (i32, i32, i32) {
    %c0_i32 = arith.constant 0 : i32
    %c0_i32_0 = arith.constant 0 : i32
    %c0_i32_1 = arith.constant 0 : i32
    return %arg0, %c0_i32, %c0_i32_0 : i32, i32, i32
  }
  func.func @transform_1(%arg0: i32) -> (i32, i32) {
    %c0_i32 = arith.constant 0 : i32
    %c0_i32_0 = arith.constant 0 : i32
    %c0_i32_1 = arith.constant 0 : i32
    return %c0_i32, %c0_i32_0 : i32, i32
  }
  func.func @transform_2(%arg0: i32) -> (i32, i32) {
    %c0_i32 = arith.constant 0 : i32
    %c0_i32_0 = arith.constant 0 : i32
    %c0_i32_1 = arith.constant 0 : i32
    return %c0_i32, %c0_i32_0 : i32, i32
  }
  func.func @transform_3(%arg0: i32) -> (i32, i32) {
    %c0_i32 = arith.constant 0 : i32
    %c0_i32_0 = arith.constant 0 : i32
    %c0_i32_1 = arith.constant 0 : i32
    return %c0_i32, %c0_i32_0 : i32, i32
  }
  func.func @transform_4(%arg0: i32) -> (i32, i32) {
    %c0_i32 = arith.constant 0 : i32
    %c0_i32_0 = arith.constant 0 : i32
    %c0_i32_1 = arith.constant 0 : i32
    return %c0_i32, %c0_i32_0 : i32, i32
  }
  func.func @transform_5(%arg0: i32) -> (i32, i32) {
    %c0_i32 = arith.constant 0 : i32
    %c0_i32_0 = arith.constant 0 : i32
    %c0_i32_1 = arith.constant 0 : i32
    return %c0_i32, %c0_i32_0 : i32, i32
  }
  func.func @transform_6(%arg0: i32) -> (i32, i32) {
    %c0_i32 = arith.constant 0 : i32
    %c0_i32_0 = arith.constant 0 : i32
    %c0_i32_1 = arith.constant 0 : i32
    return %c0_i32, %c0_i32_0 : i32, i32
  }
  func.func @transform_7(%arg0: i32) -> (i32, i32) {
    %c0_i32 = arith.constant 0 : i32
    %c0_i32_0 = arith.constant 0 : i32
    %c0_i32_1 = arith.constant 0 : i32
    return %c0_i32, %c0_i32_0 : i32, i32
  }
  func.func @transform_8(%arg0: i32) -> (i32, i32) {
    %c0_i32 = arith.constant 0 : i32
    %c0_i32_0 = arith.constant 0 : i32
    %c0_i32_1 = arith.constant 0 : i32
    return %c0_i32, %c0_i32_0 : i32, i32
  }
  func.func @transform_9(%arg0: i32) -> (i32, i32) {
    %c0_i32 = arith.constant 0 : i32
    %c0_i32_0 = arith.constant 0 : i32
    %c0_i32_1 = arith.constant 0 : i32
    return %c0_i32, %c0_i32_0 : i32, i32
  }
  func.func @transform_10(%arg0: i32) -> (i32, i32) {
    %c0_i32 = arith.constant 0 : i32
    %c0_i32_0 = arith.constant 0 : i32
    %c0_i32_1 = arith.constant 0 : i32
    return %c0_i32, %c0_i32_0 : i32, i32
  }
  func.func @transform_11(%arg0: i32) -> (i32, i32) {
    %c0_i32 = arith.constant 0 : i32
    %c0_i32_0 = arith.constant 0 : i32
    %c0_i32_1 = arith.constant 0 : i32
    return %c0_i32, %c0_i32_0 : i32, i32
  }
  func.func @transform_12(%arg0: i32) -> (i32, i32) {
    %c0_i32 = arith.constant 0 : i32
    %c0_i32_0 = arith.constant 0 : i32
    %c0_i32_1 = arith.constant 0 : i32
    return %c0_i32, %c0_i32_0 : i32, i32
  }
  func.func @transform_13(%arg0: i32) -> (i32, i32) {
    %c0_i32 = arith.constant 0 : i32
    %c0_i32_0 = arith.constant 0 : i32
    %c0_i32_1 = arith.constant 0 : i32
    return %c0_i32, %c0_i32_0 : i32, i32
  }
  func.func @transform_14(%arg0: i32) -> (i32, i32) {
    %c0_i32 = arith.constant 0 : i32
    %c0_i32_0 = arith.constant 0 : i32
    %c0_i32_1 = arith.constant 0 : i32
    return %c0_i32, %c0_i32_0 : i32, i32
  }
  func.func @transform_15(%arg0: i32) -> (i32, i32) {
    %c0_i32 = arith.constant 0 : i32
    %c0_i32_0 = arith.constant 0 : i32
    %c0_i32_1 = arith.constant 0 : i32
    return %c0_i32, %c0_i32_0 : i32, i32
  }
  func.func @transform_16(%arg0: i32) -> (i32, i32) {
    %c0_i32 = arith.constant 0 : i32
    %c0_i32_0 = arith.constant 0 : i32
    %c0_i32_1 = arith.constant 0 : i32
    return %c0_i32, %c0_i32_0 : i32, i32
  }
  func.func @transform_17(%arg0: i32) -> (i32, i32) {
    %c0_i32 = arith.constant 0 : i32
    %c0_i32_0 = arith.constant 0 : i32
    %c0_i32_1 = arith.constant 0 : i32
    return %c0_i32, %c0_i32_0 : i32, i32
  }
  func.func @transform_18(%arg0: i32) -> (i32, i32) {
    %c0_i32 = arith.constant 0 : i32
    %c0_i32_0 = arith.constant 0 : i32
    %c0_i32_1 = arith.constant 0 : i32
    return %c0_i32, %c0_i32_0 : i32, i32
  }
  func.func @transform_19(%arg0: i32) -> (i32, i32) {
    %c0_i32 = arith.constant 0 : i32
    %c0_i32_0 = arith.constant 0 : i32
    %c0_i32_1 = arith.constant 0 : i32
    return %c0_i32, %c0_i32_0 : i32, i32
  }
  func.func @transform_20(%arg0: i32) -> (i32, i32, i32) {
    %c0_i32 = arith.constant 0 : i32
    %c0_i32_0 = arith.constant 0 : i32
    %c0_i32_1 = arith.constant 0 : i32
    return %arg0, %c0_i32, %c0_i32_0 : i32, i32, i32
  }
}

</mosaic_0001>

<bundles_post_ra>
// kernel: tpu_custom_call.1
= control target key start
LH: loop header
LB: loop body
LE: loop exit
PB: predicated region body
PF: predicated region fallthrough
CT: control target
= control target key end

     0   :  { %s5272_s0 = inlined_call_operand.vmem [shape: f32[4,8,44], index: 0, kind: input, shape index: {}]   ;;  %s5273_s1 = inlined_call_operand.vmem [shape: f32[112,16], index: 1, kind: input, shape index: {}]   ;;  %s5274_s2 = inlined_call_operand.vmem [shape: f32[112,16], index: 2, kind: input, shape index: {}]   ;;  %s5275_s3 = inlined_call_operand.vmem [shape: f32[56,32], index: 3, kind: input, shape index: {}]   ;;  %s5276_s4 = inlined_call_operand.vmem [shape: f32[8,1], index: 4, kind: input, shape index: {}]   ;;  %s5277_s5 = inlined_call_operand.vmem [shape: f32[12,96], index: 5, kind: input, shape index: {}]   ;;  %s5278_s6 = inlined_call_operand.vmem [shape: f32[48,16], index: 6, kind: input, shape index: {}]   ;;  %s5279_s7 = inlined_call_operand.vmem [shape: bf16[32,32], index: 7, kind: input, shape index: {}]   ;;  %s5280_s8 = inlined_call_operand.vmem [shape: bf16[32,32], index: 8, kind: input, shape index: {}]   ;;  %s5281_s9 = inlined_call_operand.vmem [shape: bf16[16,32], index: 9, kind: input, shape index: {}]   ;;  %s5282_s10 = inlined_call_operand.vmem [shape: bf16[32,32], index: 10, kind: input, shape index: {}]   ;;  %s5283_s11 = inlined_call_operand.vmem [shape: f32[1,32], index: 11, kind: input, shape index: {}]   ;;  %s5284_s12 = inlined_call_operand.vmem [shape: bf16[32,32], index: 12, kind: input, shape index: {}]   ;;  %s5285_s13 = inlined_call_operand.vmem [shape: f32[1,32], index: 13, kind: input, shape index: {}]   ;;  %s5286_s14 = inlined_call_operand.vmem [shape: bf16[32,12], index: 14, kind: input, shape index: {}]   ;;  %s5287_s15 = inlined_call_operand.vmem [shape: bf16[32,32], index: 15, kind: input, shape index: {}]   ;;  %s5288_s16 = inlined_call_operand.vmem [shape: bf16[32,32], index: 16, kind: input, shape index: {}]   ;;  %s5289_s17 = inlined_call_operand.vmem [shape: f32[1,32], index: 17, kind: input, shape index: {}]   ;;  %s5290_s18 = inlined_call_operand.vmem [shape: bf16[32,32], index: 18, kind: input, shape index: {}]   ;;  %s5291_s19 = inlined_call_operand.vmem [shape: f32[1,32], index: 19, kind: input, shape index: {}]   ;;  %s5292_s20 = inlined_call_operand.hbm [shape: f32[4,8,128], index: 20, kind: output, shape index: {}]  }
   0x1   :  { %5322 = sst [smem:[#allocation27_spill]] %s5272_s0 }
   0x2   :  { %5323 = sst [smem:[#allocation28_spill]] %s5273_s1 }
   0x3   :  { %5324 = sst [smem:[#allocation29_spill]] %s5274_s2 }
   0x4   :  { %5325 = sst [smem:[#allocation30_spill]] %s5275_s3 }
   0x5   :  { %5326 = sst [smem:[#allocation31_spill]] %s5276_s4 }
   0x6   :  { %5327 = sst [smem:[#allocation32_spill]] %s5277_s5 }
   0x7   :  { %5328 = sst [smem:[#allocation33_spill]] %s5280_s8 }
   0x8   :  { %25 = vsyncpa [#allocation3], 0 }
   0x9   :  { %27 = vsyncpa [#allocation3 + $0x1], 0  ;;  %s4177_s1 = smov 0   ;;  %s4179_s22 = smov 0  }
   0xa   :  { %s4181_s23 = smov 0   ;;  %s4183_s24 = smov 0  }
   0xb LB: > { %5329 = sst [smem:[#allocation5_spill]] %s4048_s1  ;;  %s4198_s2 = sadd.s32 4294967295, %s4060_s24   ;;  %s4060_s24 = sphi %s4183_s24, %s5394_s24   ;;  %s4056_s23 = sphi %s4181_s23, %s5396_s23   ;;  %s4052_s22 = sphi %s4179_s22, %s5398_s22   ;;  %s4048_s1 = sphi %s4177_s1, %s5397_s1  }
   0xc   : > { %5330 = sst [smem:[#allocation6_spill]] %s4056_s23  ;;  %s3096_s25 = sadd.s32 4294967294, %s4060_s24  }
   0xd   : > { %s4202_s3 = sadd.s32 1, %s4060_s24   ;;  %s465_s26 = sadd.s32 1, %s4056_s23 }
   0xe   : > { %5331 = sst [smem:[#allocation7_spill]] %s4202_s3  ;;  %s462_s27 = ssub.s32 %s4060_s24, %s4202_s3 }
   0xf   : > { %p475_p0 = scmp.ne.s32.totalorder %s4056_s23, %s4052_s22  ;;  %p463_p1 = scmp.eq.s32.totalorder %s462_s27, 0 }
  0x10   : > { %p476_p2 = scmp.eq.s32.totalorder %s4198_s2, 1  ;;  %p481_p3 = scmp.ne.s32.totalorder %s4052_s22, %s4048_s1 }
  0x11   : > { %p482_p4 = scmp.eq.s32.totalorder %s3096_s25, 1  ;;  %p3099_p7 = scmp.ge.s32.totalorder %s4060_s24, 1 }
  0x12   : > { %s4213_s28 = scalar_select %p463_p1, %s4056_s23, %s465_s26  }
  0x13   : > { %p4215_p5 = por %p476_p2, %p475_p0  ;;  %p4219_p6 = por %p482_p4, %p481_p3 }
  0x14   : > { %5332 = sst [smem:[#allocation8_spill]] %s4213_s28  ;;  %p566_p8 = scmp.lt.s32.totalorder %s4060_s24, 3 }
  0x15   : > { %s5334_s29 = scalar_select %p4219_p6, 1, 0 }
  0x16   : > { %p567_p9 = pnand %p3099_p7, %p566_p8 }
  0x17   : > { %5335 = sst [smem:[#allocation9_spill]] %s5334_s29 }
  0x18   : > { %570 = sbr.rel (%p567_p9) target bundleno = 2722 (0xaa2), region = 100 }
  0x1f   : > { %s3101_s30 = sshll.u32 %s4198_s2, 1  ;;  %s5336_s27 = sld [smem:[#allocation28_spill]]  ;;  %vm662_vm0 = vcmask 130048   ;;  %vm1104_vm1 = vcmask 1043456   ;;  %vm4062_vm2 = vmmov 1   ;;  %vm1075_vm4 = vcmask 97280  }
  0x20   : > { %p625_p10 = scmp.lt.s32.totalorder %s3101_s30, 3  ;;  %s5338_s0 = sld [smem:[#allocation27_spill]]  ;;  %vm3791_vm3 = vmpackc.low %vm1104_vm1, %vm4062_vm2  ;;  %vm4065_vm5 = vmmov 0   ;;  %vm1629_vm6 = vcmask 261120   ;;  %vm1319_vm7 = vcmask 392192   ;;  %vm2635_vm8 = vcmask 916480  }
  0x21   : > { %s5342_s5 = sld [smem:[#allocation32_spill]]  ;;  %s5302_s1 = smov 96   ;;  %vm3017_vm9 = vcmask 359680  }
  0x22   : > { %s5400_s30 = smov (!%p625_p10, %s3101_s30), 3  ;;  %s5357_s8 = sld [smem:[#allocation33_spill]] }
  0x23   : > { %s3102_s28 = sshll.u32 %s5400_s30, 3  ;;  %s5373_s23 = sld [smem:[#allocation30_spill]] }
  0x24   : > { %s621_s29 = sand.u32 1, %s4052_s22  }
  0x25   : > { %v4229_v0 = vld [vmem:[%s5336_s27 + $0x60] sm:$0xff]  ;;  %v4252_v5 = vld [vmem:[%s5336_s27 + $0x68] sm:$0xff]  ;;  %v4269_v8 = vld [vmem:[%s5336_s27 + $0x10] sm:$0xff]  ;;  %s3100_s25 = sshll.u32 %s621_s29, 4 }
  0x26   : > { %5337 = vst [vmem:[#allocation10_spill] sm:$0xff] %v4229_v0  ;;  %v4234_v1 = vld [vmem:[%s5336_s27] sm:$0xff]  ;;  %3420 = vmatprep.mubr.msk.f32.mxu1 %vm662_vm0, %v4229_v0  ;;  %s4243_s21 = scalar_lea.vmem %s5338_s0, %s3102_s28  ;;  %5340 = vst [vmem:[#allocation12_spill] sm:$0xff] %v4252_v5  ;;  %v4257_v6 = vld [vmem:[%s5336_s27 + $0x8] sm:$0xff]  ;;  %s5341_s28 = sld [smem:[#allocation29_spill]] }
  0x27   : > { %3402 = vmatprep.mubr.msk.f32.mxu0 %vm662_vm0, %v4234_v1  ;;  %v632_v2 = vld [vmem:[%s4243_s21] sm:$0xff]  ;;  %v633_v3 = vld [vmem:[%s4243_s21 + $0x8] sm:$0xff]  ;;  %v4278_v10 = vld [vmem:[%s5336_s27 + $0x18] sm:$0xff]  ;;  %s623_s30 = scalar_lea.vmem [#allocation2], %s3100_s25  ;;  %s4069_s25 = smov [#allocation2]  }
  0x28   : > { %v4247_v4 = vpack.c.bf16 %v633_v3, %v632_v2  ;;  %v4290_v12 = vld [vmem:[%s5336_s27 + $0x20] sm:$0xff]  ;;  %v4302_v14 = vld [vmem:[%s5336_s27 + $0x28] sm:$0xff]  ;;  %v4313_v16 = vld [vmem:[%s5336_s27 + $0x30] sm:$0xff]  ;;  %s4002_s26 = sshll.u32 %s4069_s25, 4  ;;  %s4003_s26 = int_to_ptr.vmem [resolvable:$false] %s4002_s26 }
  0x29   : > { %v4330_v18 = vld [vmem:[%s5336_s27 + $0x38] sm:$0xff]  ;;  %v4338_v20 = vld [vmem:[%s5336_s27 + $0x40] sm:$0xff]  ;;  %v4352_v22 = vld [vmem:[%s5336_s27 + $0x48] sm:$0xff]  ;;  %s5374_s3 = smov %s5373_s23 }
  0x2a   : > { %5339 = vst [vmem:[#allocation11_spill] sm:$0xff] %v4247_v4  ;;  %3864 = vmatprep.subr.bf16.mxu1 %v4247_v4  ;;  %3783 = vmatprep.subr.bf16.mxu0 %v4247_v4  ;;  %v4360_v24 = vld [vmem:[%s5336_s27 + $0x50] sm:$0xff]  ;;  %v4374_v26 = vld [vmem:[%s5336_s27 + $0x58] sm:$0xff]  ;;  %v1031_v31 = vld [vmem:[%s5342_s5] sm:$0xff] }
  0x2b   : > { %3865 = vmatpush3.bf16.msra.mxu1 %v4247_v4  ;;  %3785 = vmatpush3.bf16.msra.mxu0 %v4247_v4  ;;  %v1032_v32 = vld [vmem:[%s5342_s5 + $0x8] sm:$0xf]  ;;  %s4067_s5 = smov 32  }
  0x2c   : > { %v648_v7 = vld [vmem:[%s5341_s28] sm:$0xff]  ;;  %3787 = vmatprep.subr.bf16.mxu1 %v4247_v4  ;;  %v649_v9 = vld [vmem:[%s5341_s28 + $0x8] sm:$0xff]  ;;  %v650_v11 = vld [vmem:[%s5341_s28 + $0x10] sm:$0xff]  ;;  %v3790_v33 = vpack.c.bf16 %v1032_v32, %v1031_v31 }
  0x2d   : > { %v651_v13 = vld [vmem:[%s5341_s28 + $0x18] sm:$0xff]  ;;  %v652_v15 = vld [vmem:[%s5341_s28 + $0x20] sm:$0xff]  ;;  %v653_v17 = vld [vmem:[%s5341_s28 + $0x28] sm:$0xff] }
  0x2e   : > { %3421 = vmatmul.mubr.msk.f32.vlgmr.msra.gmra.mrb[0].mxu1 %vm662_vm0, %v4252_v5  ;;  %3403 = vmatmul.mubr.msk.f32.vlgmr.msra.gmra.mrb[0].mxu0 %vm662_vm0, %v4257_v6  ;;  %v654_v19 = vld [vmem:[%s5341_s28 + $0x30] sm:$0xff]  ;;  %v655_v21 = vld [vmem:[%s5341_s28 + $0x38] sm:$0xff]  ;;  %v656_v23 = vld [vmem:[%s5341_s28 + $0x40] sm:$0xff] }
  0x2f   : > { %3789 = vmatpush3.bf16.msra.mxu1 %v4247_v4  ;;  %3427 = vmatprep.mubr.msk.f32.mxu1 %vm662_vm0, %v648_v7  ;;  %v657_v25 = vld [vmem:[%s5341_s28 + $0x48] sm:$0xff]  ;;  %v658_v27 = vld [vmem:[%s5341_s28 + $0x50] sm:$0xff]  ;;  %v659_v28 = vld [vmem:[%s5341_s28 + $0x58] sm:$0xff] }
  0x30   : > { %3405 = vmatprep.mubr.msk.f32.mxu0 %vm662_vm0, %v4269_v8  ;;  %v660_v29 = vld [vmem:[%s5341_s28 + $0x60] sm:$0xff]  ;;  %v661_v30 = vld [vmem:[%s5341_s28 + $0x68] sm:$0xff]  ;;  %3792 = vmatprep.subr.msk.bf16.mxu0 %vm3791_vm3, %v3790_v33 }
  0x31   : > { %3795 = vmatpush3.bf16.msk.msra.mxu0 %vm3791_vm3, %v3790_v33 }
  0x32   : > { %3428 = vmatmul.mubr.msk.f32.vlgmr.msra.gmra.mrb[2].mxu1 %vm662_vm0, %v649_v9  ;;  %3406 = vmatmul.mubr.msk.f32.gmra.mrb[2].mxu0 %vm662_vm0, %v4278_v10 }
  0x33   : > { %3430 = vmatprep.mubr.msk.f32.mxu1 %vm662_vm0, %v650_v11  ;;  %3408 = vmatprep.mubr.msk.f32.mxu0 %vm662_vm0, %v4290_v12 }
  0x36   : > { %3431 = vmatmul.mubr.msk.f32.gmra.mrb[4].mxu1 %vm662_vm0, %v651_v13  ;;  %3409 = vmatmul.mubr.msk.f32.gmra.mrb[4].mxu0 %vm662_vm0, %v4302_v14 }
  0x37   : > { %3433 = vmatprep.mubr.msk.f32.mxu1 %vm662_vm0, %v652_v15  ;;  %3411 = vmatprep.mubr.msk.f32.mxu0 %vm662_vm0, %v4313_v16 }
  0x3a   : > { %3434 = vmatmul.mubr.msk.f32.gmra.mrb[6].mxu1 %vm662_vm0, %v653_v17  ;;  %3412 = vmatmul.mubr.msk.f32.gmra.mrb[6].mxu0 %vm662_vm0, %v4330_v18 }
  0x3b   : > { %3436 = vmatprep.mubr.msk.f32.mxu1 %vm662_vm0, %v654_v19  ;;  %3414 = vmatprep.mubr.msk.f32.mxu0 %vm662_vm0, %v4338_v20  ;;  %v5304_v19 = vmov 0.0  }
  0x3c   : > { %3506 = vmatprep.subr.bf16.mxu0 %v5304_v19 }
  0x3e   : > { %3437 = vmatmul.mubr.msk.f32.gmra.mrb[8].mxu1 %vm662_vm0, %v655_v21  ;;  %3415 = vmatmul.mubr.msk.f32.gmra.mrb[8].mxu0 %vm662_vm0, %v4352_v22 }
  0x3f   : > { %3439 = vmatprep.mubr.msk.f32.mxu1 %vm662_vm0, %v656_v23  ;;  %3417 = vmatprep.mubr.msk.f32.mxu0 %vm662_vm0, %v4360_v24 }
  0x42   : > { %3440 = vmatmul.mubr.msk.f32.gmra.mrb[10].mxu1 %vm662_vm0, %v657_v25  ;;  %3418 = vmatmul.mubr.msk.f32.gmra.mrb[10].mxu0 %vm662_vm0, %v4374_v26 }
  0x43   : > { %3442 = vmatprep.mubr.msk.f32.mxu1 %vm662_vm0, %v658_v27 }
  0x46   : > { %3443 = vmatmul.mubr.msk.f32.gmra.mrb[12].mxu1 %vm662_vm0, %v659_v28 }
  0x47   : > { %3445 = vmatprep.mubr.msk.f32.mxu1 %vm662_vm0, %v660_v29 }
  0x4a   : > { %3446 = vmatmul.mubr.msk.f32.gmra.mrb[14].mxu1 %vm662_vm0, %v661_v30 }
 0x101   : > { %v4401_v34 = vpop.f32.mrb[0].mxu1  ;;  %v4403_v35 = vpop.f32.mrb[0].mxu0 }
 0x102   : > { %v4405_v36 = vpop.f32.mrb[1].mxu1  ;;  %v4407_v37 = vpop.f32.mrb[1].mxu0 }
 0x105   : > { %v4413_v40 = vpop.f32.mrb[2].mxu1  ;;  %v4415_v41 = vpop.f32.mrb[2].mxu0 }
 0x106   : > { %v4419_v42 = vsub.f32 %v4403_v35, %v4413_v40  ;;  %v4421_v43 = vpop.f32.mrb[3].mxu1  ;;  %v4423_v44 = vpop.f32.mrb[3].mxu0 }
 0x107   : > { %v4429_v46 = vsub.f32 %v4407_v37, %v4421_v43 }
 0x108   : > { %5343 = vst [vmem:[#allocation13_spill] sm:$0xff] %v4419_v42 }
 0x109   : > { %5344 = vst [vmem:[#allocation14_spill] sm:$0xff] %v4429_v46  ;;  %v4433_v48 = vpop.f32.mrb[4].mxu1  ;;  %1047 = vrot.lane.b32.xlu0 %v4429_v46, %s5302_s1  ;;  %v4437_v49 = vpop.f32.mrb[4].mxu0 }
 0x10a   : > { %v4441_v50 = vsub.f32 %v4415_v41, %v4433_v48  ;;  %v4443_v51 = vpop.f32.mrb[5].mxu1  ;;  %v4445_v52 = vpop.f32.mrb[5].mxu0 }
 0x10b   : > { %v4451_v54 = vsub.f32 %v4423_v44, %v4443_v51 }
 0x10c   : > { %5345 = vst [vmem:[#allocation15_spill] sm:$0xff] %v4441_v50 }
 0x10d   : > { %5346 = vst [vmem:[#allocation16_spill] sm:$0xff] %v4451_v54  ;;  %v4455_v56 = vpop.f32.mrb[6].mxu1  ;;  %1049 = vrot.lane.b32.xlu0 %v4419_v42, %s5302_s1  ;;  %1051 = vrot.lane.b32.xlu1 %v4451_v54, %s5302_s1  ;;  %v4461_v57 = vpop.f32.mrb[6].mxu0 }
 0x10e   : > { %v4465_v58 = vsub.f32 %v4437_v49, %v4455_v56  ;;  %v4467_v59 = vpop.f32.mrb[7].mxu1  ;;  %v4469_v60 = vpop.f32.mrb[7].mxu0 }
 0x10f   : > { %v4473_v61 = vsub.f32 %v4445_v52, %v4467_v59 }
 0x110   : > { %5347 = vst [vmem:[#allocation17_spill] sm:$0xff] %v4465_v58 }
 0x111   : > { %5348 = vst [vmem:[#allocation18_spill] sm:$0xff] %v4473_v61  ;;  %v4479_v2 = vpop.f32.mrb[8].mxu1  ;;  %1053 = vrot.lane.b32.xlu1 %v4441_v50, %s5302_s1  ;;  %1055 = vrot.lane.b32.xlu0 %v4473_v61, %s5302_s1  ;;  %v4485_v3 = vpop.f32.mrb[8].mxu0 }
 0x112   : > { %v4489_v7 = vsub.f32 %v4461_v57, %v4479_v2  ;;  %v4491_v9 = vpop.f32.mrb[9].mxu1  ;;  %v4493_v11 = vpop.f32.mrb[9].mxu0 }
 0x113   : > { %v4497_v13 = vsub.f32 %v4469_v60, %v4491_v9 }
 0x114   : > { %5349 = vst [vmem:[#allocation19_spill] sm:$0xff] %v4489_v7 }
 0x115   : > { %5350 = vst [vmem:[#allocation20_spill] sm:$0xff] %v4497_v13  ;;  %v4504_v21 = vpop.f32.mrb[10].mxu1  ;;  %1057 = vrot.lane.b32.xlu1 %v4465_v58, %s5302_s1  ;;  %1059 = vrot.lane.b32.xlu0 %v4497_v13, %s5302_s1  ;;  %v4510_v23 = vpop.f32.mrb[10].mxu0 }
 0x116   : > { %v4514_v25 = vsub.f32 %v4485_v3, %v4504_v21  ;;  %v4516_v27 = vpop.f32.mrb[11].mxu1  ;;  %v4518_v28 = vpop.f32.mrb[11].mxu0 }
 0x117   : > { %v4522_v29 = vsub.f32 %v4493_v11, %v4516_v27 }
 0x118   : > { %5351 = vst [vmem:[#allocation21_spill] sm:$0xff] %v4514_v25 }
 0x119   : > { %5352 = vst [vmem:[#allocation22_spill] sm:$0xff] %v4522_v29  ;;  %v4528_v32 = vpop.f32.mrb[12].mxu1  ;;  %1061 = vrot.lane.b32.xlu1 %v4489_v7, %s5302_s1  ;;  %1063 = vrot.lane.b32.xlu0 %v4522_v29, %s5302_s1 }
 0x11a   : > { %v4536_v33 = vsub.f32 %v4510_v23, %v4528_v32  ;;  %v998_v38 = vpop.f32.mrb[13].mxu1 }
 0x11b   : > { %v4539_v17 = vsub.f32 %v4518_v28, %v998_v38  ;;  %v1611_v63 = vpack.c.bf16 %v4528_v32, %v998_v38  ;;  %v3951_v32 = vld [vmem:[%s5357_s8] sm:$0xff]  }
 0x11c   : > { %5353 = vst [vmem:[#allocation23_spill] sm:$0xff] %v4536_v33 }
 0x11d   : > { %5354 = vst [vmem:[#allocation24_spill] sm:$0xff] %v4539_v17  ;;  %v3447_v55 = vpop.f32.mrb[14].mxu1  ;;  %1065 = vrot.lane.b32.xlu1 %v4514_v25, %s5302_s1  ;;  %1067 = vrot.lane.b32.xlu0 %v4539_v17, %s5302_s1 }
 0x11e   : > { %v4547_v31 = vsub.f32 %v4401_v34, %v3447_v55  ;;  %v1008_v47 = vpop.f32.mrb[15].mxu1 }
 0x11f   : > { %v4550_v39 = vsub.f32 %v4405_v36, %v1008_v47  ;;  %v1612_v30 = vpack.c.bf16 %v3447_v55, %v1008_v47  ;;  %v3952_v47 = vld [vmem:[%s5357_s8 + $0x8] sm:$0xff]   ;;  %s5377_s8 = smov 96  }
 0x120   : > { %5355 = vst [vmem:[#allocation25_spill] sm:$0xff] %v4547_v31 }
 0x121   : > { %5356 = vst [vmem:[#allocation26_spill] sm:$0xff] %v4550_v39  ;;  %1069 = vrot.lane.b32.xlu1 %v4536_v33, %s5302_s1  ;;  %1071 = vrot.lane.b32.xlu0 %v4550_v39, %s5302_s1 }
 0x125   : > { %1073 = vrot.lane.b32.xlu1 %v4547_v31, %s5302_s1  ;;  %s4066_s1 = smov 80  }
 0x17b   : > { %v1048_v38 = vpop.permute.xlu0 %1047 }
 0x17c   : > { %3452 = vmatprep.mubr.msk.f32.mxu0 %vm1075_vm4, %v1048_v38 }
 0x17f   : > { %v1050_v15 = vpop.permute.xlu0 %1049  ;;  %v1052_v62 = vpop.permute.xlu1 %1051 }
 0x180   : > { %3453 = vmatmul.mubr.msk.f32.vlgmr.msra.gmra.mrb[12].mxu0 %vm1075_vm4, %v1050_v15 }
 0x181   : > { %3455 = vmatprep.mubr.msk.f32.mxu0 %vm1075_vm4, %v1052_v62  ;;  %3507 = vmatpush3.bf16.msra.mxu0 %v3951_v32 }
 0x182   : > { %3508 = vmatprep.subr.bf16.mxu0 %v5304_v19 }
 0x183   : > { %v1054_v55 = vpop.permute.xlu1 %1053  ;;  %v1056_v53 = vpop.permute.xlu0 %1055 }
 0x184   : > { %3456 = vmatmul.mubr.msk.f32.gmra.mrb[14].mxu0 %vm1075_vm4, %v1054_v55 }
 0x185   : > { %3458 = vmatprep.mubr.msk.f32.mxu0 %vm1075_vm4, %v1056_v53  ;;  %3509 = vmatpush3.bf16.msra.mxu0 %v3952_v47 }
 0x186   : > { %3570 = vmatprep.subr.bf16.mxu0 %v5304_v19 }
 0x187   : > { %v1058_v38 = vpop.permute.xlu1 %1057  ;;  %v1060_v15 = vpop.permute.xlu0 %1059 }
 0x188   : > { %3459 = vmatmul.mubr.msk.f32.gmra.mrb[16].mxu0 %vm1075_vm4, %v1058_v38  ;;  %v5358_v38 = vpack.c.bf16 %v4413_v40, %v4421_v43  ;;  %v5361_v40 = vpack.c.bf16 %v4479_v2, %v4491_v9  ;;  %v5362_v43 = vpack.c.bf16 %v4504_v21, %v4516_v27  ;;  %v1317_v9 = vld [vmem:[%s5278_s6 + $0x20] sm:$0xff]  ;;  %v1318_v21 = vld [vmem:[%s5278_s6 + $0x28] sm:$0xff] }
 0x189   : > { %3461 = vmatprep.mubr.msk.f32.mxu0 %vm1075_vm4, %v1060_v15  ;;  %v3804_v27 = vpack.c.bf16 %v1318_v21, %v1317_v9 }
 0x18b   : > { %v1062_v62 = vpop.permute.xlu1 %1061  ;;  %v1064_v32 = vpop.permute.xlu0 %1063 }
 0x18c   : > { %3462 = vmatmul.mubr.msk.f32.gmra.mrb[18].mxu0 %vm1075_vm4, %v1062_v62 }
 0x18d   : > { %3464 = vmatprep.mubr.msk.f32.mxu0 %vm1075_vm4, %v1064_v32 }
 0x18f   : > { %v1066_v45 = vpop.permute.xlu1 %1065  ;;  %v1068_v4 = vpop.permute.xlu0 %1067 }
 0x190   : > { %3465 = vmatmul.mubr.msk.f32.gmra.mrb[20].mxu0 %vm1075_vm4, %v1066_v45  ;;  %v5360_v45 = vpack.c.bf16 %v4455_v56, %v4467_v59  ;;  %v1315_v56 = vld [vmem:[%s5278_s6 + $0x10] sm:$0xff] }
 0x191   : > { %3467 = vmatprep.mubr.msk.f32.mxu0 %vm1075_vm4, %v1068_v4  ;;  %v5359_v4 = vpack.c.bf16 %v4433_v48, %v4443_v51  ;;  %v1313_v48 = vld [vmem:[%s5278_s6] sm:$0xff]  ;;  %v1314_v51 = vld [vmem:[%s5278_s6 + $0x8] sm:$0xff] }
 0x192   : > { %v3796_v59 = vpack.c.bf16 %v1314_v51, %v1313_v48 }
 0x193   : > { %v1070_v53 = vpop.permute.xlu1 %1069  ;;  %v1072_v47 = vpop.permute.xlu0 %1071 }
 0x194   : > { %3468 = vmatmul.mubr.msk.f32.gmra.mrb[22].mxu0 %vm1075_vm4, %v1070_v53  ;;  %3797 = vmatprep.subr.bf16.mxu1 %v3796_v59 }
 0x195   : > { %3470 = vmatprep.mubr.msk.f32.mxu0 %vm1075_vm4, %v1072_v47  ;;  %3799 = vmatpush3.bf16.msra.mxu1 %v3796_v59 }
 0x197   : > { %v1074_v55 = vpop.permute.xlu1 %1073 }
 0x198   : > { %3471 = vmatmul.mubr.msk.f32.gmra.mrb[24].mxu0 %vm1075_vm4, %v1074_v55 }
 0x199   : > { %3510 = vmatprep.mubr.msk.bf16.mxu0 %vm4065_vm5, %v5304_v19 }
 0x19c   : > { %3511 = vmatmul.mubr.msk.bf16.vlgmr.msra.gmra.mrb[28].mxu0 %vm1629_vm6, %v5358_v38 }
 0x19d   : > { %3514 = vmatprep.mubr.msk.bf16.mxu0 %vm4065_vm5, %v5304_v19 }
 0x1a4   : > { %3515 = vmatmul.mubr.msk.bf16.gmra.mrb[32].mxu0 %vm1629_vm6, %v5359_v4 }
 0x1a5   : > { %3518 = vmatprep.mubr.msk.bf16.mxu0 %vm4065_vm5, %v5304_v19 }
 0x1ac   : > { %3519 = vmatmul.mubr.msk.bf16.gmra.mrb[36].mxu0 %vm1629_vm6, %v5360_v45 }
 0x1ad   : > { %3522 = vmatprep.mubr.msk.bf16.mxu0 %vm4065_vm5, %v5304_v19 }
 0x1b4   : > { %3523 = vmatmul.mubr.msk.bf16.gmra.mrb[40].mxu0 %vm1629_vm6, %v5361_v40 }
 0x1b5   : > { %3526 = vmatprep.mubr.msk.bf16.mxu0 %vm4065_vm5, %v5304_v19 }
 0x1bc   : > { %3527 = vmatmul.mubr.msk.bf16.gmra.mrb[44].mxu0 %vm1629_vm6, %v5362_v43 }
 0x1bd   : > { %3530 = vmatprep.mubr.msk.bf16.mxu0 %vm4065_vm5, %v5304_v19 }
 0x1c4   : > { %3531 = vmatmul.mubr.msk.bf16.gmra.mrb[48].mxu0 %vm1629_vm6, %v1611_v63  ;;  %v1316_v63 = vld [vmem:[%s5278_s6 + $0x18] sm:$0xff] }
 0x1c5   : > { %3534 = vmatprep.mubr.msk.bf16.mxu0 %vm4065_vm5, %v5304_v19  ;;  %v3800_v2 = vpack.c.bf16 %v1316_v63, %v1315_v56 }
 0x1c7   : > { %3801 = vmatprep.subr.bf16.mxu1 %v3800_v2 }
 0x1c8   : > { %3803 = vmatpush3.bf16.msra.mxu1 %v3800_v2 }
 0x1c9   : > { %3805 = vmatprep.subr.bf16.mxu1 %v3804_v27 }
 0x1cc   : > { %3535 = vmatmul.mubr.msk.bf16.gmra.mrb[52].mxu0 %vm1629_vm6, %v1612_v30  ;;  %3807 = vmatpush3.bf16.msra.mxu1 %v3804_v27 }
 0x1cd   : > { %3572 = vmatprep.mubr.msk.bf16.mxu0 %vm4065_vm5, %v5304_v19  ;;  %3538 = vmatprep.subr.bf16.mxu1 %v5304_v19 }
 0x253   : > { %v3454_v30 = vpop.f32.mrb[12].mxu0 }
 0x254   : > { %1259 = vrot.lane.b32.xlu1 %v3454_v30, %s4066_s1  ;;  %v1174_v15 = vpop.f32.mrb[13].mxu0 }
 0x255   : > { %1257 = vrot.lane.b32.xlu0 %v1174_v15, %s4066_s1 }
 0x257   : > { %v4637_v62 = vpop.f32.mrb[14].mxu0 }
 0x258   : > { %1263 = vrot.lane.b32.xlu1 %v4637_v62, %s4066_s1  ;;  %v1184_v32 = vpop.f32.mrb[15].mxu0 }
 0x259   : > { %1261 = vrot.lane.b32.xlu0 %v1184_v32, %s4066_s1 }
 0x25b   : > { %v4640_v53 = vpop.f32.mrb[16].mxu0 }
 0x25c   : > { %1267 = vrot.lane.b32.xlu1 %v4640_v53, %s4066_s1  ;;  %v4643_v47 = vpop.f32.mrb[17].mxu0 }
 0x25d   : > { %1265 = vrot.lane.b32.xlu0 %v4643_v47, %s4066_s1 }
 0x25f   : > { %v4646_v55 = vpop.f32.mrb[18].mxu0 }
 0x260   : > { %1271 = vrot.lane.b32.xlu1 %v4646_v55, %s4066_s1  ;;  %v4649_v38 = vpop.f32.mrb[19].mxu0 }
 0x261   : > { %1269 = vrot.lane.b32.xlu0 %v4649_v38, %s4066_s1 }
 0x263   : > { %v4652_v4 = vpop.f32.mrb[20].mxu0 }
 0x264   : > { %1275 = vrot.lane.b32.xlu1 %v4652_v4, %s4066_s1  ;;  %v4655_v45 = vpop.f32.mrb[21].mxu0 }
 0x265   : > { %1273 = vrot.lane.b32.xlu0 %v4655_v45, %s4066_s1 }
 0x267   : > { %v4658_v40 = vpop.f32.mrb[22].mxu0 }
 0x268   : > { %1279 = vrot.lane.b32.xlu1 %v4658_v40, %s4066_s1  ;;  %v4661_v43 = vpop.f32.mrb[23].mxu0 }
 0x269   : > { %1277 = vrot.lane.b32.xlu0 %v4661_v43, %s4066_s1 }
 0x26b   : > { %v4664_v48 = vpop.f32.mrb[24].mxu0 }
 0x26c   : > { %1283 = vrot.lane.b32.xlu1 %v4664_v48, %s4066_s1  ;;  %v4667_v51 = vpop.f32.mrb[25].mxu0 }
 0x26d   : > { %1281 = vrot.lane.b32.xlu0 %v4667_v51, %s4066_s1  ;;  %s5391_s1 = sld [smem:[#allocation31_spill]] }
 0x26f   : > { %v4670_v56 = vpop.f32.mrb[28].mxu0 }
 0x270   : > { %v3512_v59 = vpop.f32.mrb[29].mxu0 }
 0x271   : > { %v4672_v63 = vpop.f32.mrb[30].mxu0 }
 0x272   : > { %v3513_v2 = vpop.f32.mrb[31].mxu0 }
 0x277   : > { %v4674_v9 = vpop.f32.mrb[32].mxu0 }
 0x278   : > { %v3516_v21 = vpop.f32.mrb[33].mxu0 }
 0x279   : > { %v4676_v27 = vpop.f32.mrb[34].mxu0 }
 0x27a   : > { %v3517_v19 = vpop.f32.mrb[35].mxu0 }
 0x27f   : > { %v4678_v31 = vpop.f32.mrb[36].mxu0 }
 0x280   : > { %v3520_v39 = vpop.f32.mrb[37].mxu0 }
 0x281   : > { %v4680_v33 = vpop.f32.mrb[38].mxu0 }
 0x282   : > { %v3521_v17 = vpop.f32.mrb[39].mxu0 }
 0x287   : > { %v4682_v25 = vpop.f32.mrb[40].mxu0 }
 0x288   : > { %v3524_v29 = vpop.f32.mrb[41].mxu0 }
 0x289   : > { %v4684_v7 = vpop.f32.mrb[42].mxu0 }
 0x28a   : > { %v3525_v59 = vpop.f32.mrb[43].mxu0 }
 0x28f   : > { %v4686_v13 = vpop.f32.mrb[44].mxu0 }
 0x290   : > { %v3528_v2 = vpop.f32.mrb[45].mxu0 }
 0x291   : > { %v4688_v58 = vpop.f32.mrb[46].mxu0  ;;  %v3953_v2 = vld [vmem:[%s5279_s7] sm:$0xff]  }
 0x292   : > { %v3529_v21 = vpop.f32.mrb[47].mxu0 }
 0x297   : > { %v4690_v61 = vpop.f32.mrb[48].mxu0 }
 0x298   : > { %v3532_v19 = vpop.f32.mrb[49].mxu0 }
 0x299   : > { %v4692_v50 = vpop.f32.mrb[50].mxu0 }
 0x29a   : > { %v3533_v39 = vpop.f32.mrb[51].mxu0 }
 0x29f   : > { %v4694_v54 = vpop.f32.mrb[52].mxu0 }
 0x2a0   : > { %v3536_v17 = vpop.f32.mrb[53].mxu0 }
 0x2a1   : > { %v4696_v42 = vpop.f32.mrb[54].mxu0  ;;  %v3954_v17 = vld [vmem:[%s5279_s7 + $0x8] sm:$0xff]  }
 0x2a2   : > { %v3537_v29 = vpop.f32.mrb[55].mxu0 }
 0x2c6   : > { %v1260_v46 = vpop.permute.xlu1 %1259 }
 0x2c7   : > { %v1258_v59 = vpop.permute.xlu0 %1257  ;;  %v1300_v21 = vmul.f32 %v3454_v30, %v1260_v46 }
 0x2c8   : > { %v1299_v5 = vmul.f32 %v1258_v59, %v1174_v15  ;;  %v5363_v15 = vmov 0.0  }
 0x2ca   : > { %v1264_v0 = vpop.permute.xlu1 %1263  ;;  %3485 = vmatprep.mubr.msk.f32.mxu1 %vm1319_vm7, %v1299_v5 }
 0x2cb   : > { %3486 = vmatmul.mubr.msk.f32.vlgmr.msra.gmra.mrb[16].mxu1 %vm1319_vm7, %v1300_v21  ;;  %v1262_v19 = vpop.permute.xlu0 %1261  ;;  %v1302_v29 = vmul.f32 %v4637_v62, %v1264_v0 }
 0x2cc   : > { %v1301_v39 = vmul.f32 %v1262_v19, %v1184_v32  ;;  %3539 = vmatpush3.bf16.msra.mxu1 %v3953_v2 }
 0x2cd   : > { %3540 = vmatprep.subr.bf16.mxu1 %v5363_v15 }
 0x2ce   : > { %v1268_v59 = vpop.permute.xlu1 %1267  ;;  %3488 = vmatprep.mubr.msk.f32.mxu1 %vm1319_vm7, %v1301_v39 }
 0x2cf   : > { %3489 = vmatmul.mubr.msk.f32.gmra.mrb[18].mxu1 %vm1319_vm7, %v1302_v29  ;;  %v1266_v46 = vpop.permute.xlu0 %1265  ;;  %v1304_v30 = vmul.f32 %v4640_v53, %v1268_v59 }
 0x2d0   : > { %v1303_v5 = vmul.f32 %v1266_v46, %v4643_v47  ;;  %3541 = vmatpush3.bf16.msra.mxu1 %v3954_v17 }
 0x2d1   : > { %3600 = vmatprep.subr.bf16.mxu1 %v5363_v15 }
 0x2d2   : > { %v1272_v32 = vpop.permute.xlu1 %1271  ;;  %3491 = vmatprep.mubr.msk.f32.mxu1 %vm1319_vm7, %v1303_v5 }
 0x2d3   : > { %3492 = vmatmul.mubr.msk.f32.gmra.mrb[20].mxu1 %vm1319_vm7, %v1304_v30  ;;  %v1270_v0 = vpop.permute.xlu0 %1269  ;;  %v1306_v2 = vmul.f32 %v4646_v55, %v1272_v32 }
 0x2d4   : > { %v1305_v62 = vmul.f32 %v1270_v0, %v4649_v38 }
 0x2d6   : > { %v1276_v21 = vpop.permute.xlu1 %1275  ;;  %3494 = vmatprep.mubr.msk.f32.mxu1 %vm1319_vm7, %v1305_v62 }
 0x2d7   : > { %3495 = vmatmul.mubr.msk.f32.gmra.mrb[22].mxu1 %vm1319_vm7, %v1306_v2  ;;  %v1274_v47 = vpop.permute.xlu0 %1273  ;;  %v1308_v19 = vmul.f32 %v4652_v4, %v1276_v21 }
 0x2d8   : > { %v1307_v53 = vmul.f32 %v1274_v47, %v4655_v45 }
 0x2da   : > { %v1280_v39 = vpop.permute.xlu1 %1279  ;;  %3497 = vmatprep.mubr.msk.f32.mxu1 %vm1319_vm7, %v1307_v53 }
 0x2db   : > { %3498 = vmatmul.mubr.msk.f32.gmra.mrb[24].mxu1 %vm1319_vm7, %v1308_v19  ;;  %v1278_v17 = vpop.permute.xlu0 %1277  ;;  %v1310_v55 = vmul.f32 %v4658_v40, %v1280_v39  ;;  %v5364_v40 = vpack.c.bf16 %v4403_v35, %v4407_v37  ;;  %v5367_v35 = vpack.c.bf16 %v4461_v57, %v4469_v60  ;;  %v5368_v37 = vpack.c.bf16 %v4485_v3, %v4493_v11 }
 0x2dc   : > { %v1309_v38 = vmul.f32 %v1278_v17, %v4661_v43  ;;  %v5365_v43 = vpack.c.bf16 %v4415_v41, %v4423_v44  ;;  %v5369_v41 = vpack.c.bf16 %v4510_v23, %v4518_v28  ;;  %v5370_v44 = vpack.c.bf16 %v4401_v34, %v4405_v36 }
 0x2de   : > { %v1284_v29 = vpop.permute.xlu1 %1283  ;;  %3500 = vmatprep.mubr.msk.f32.mxu1 %vm1319_vm7, %v1309_v38 }
 0x2df   : > { %3501 = vmatmul.mubr.msk.f32.gmra.mrb[26].mxu1 %vm1319_vm7, %v1310_v55  ;;  %v1282_v59 = vpop.permute.xlu0 %1281  ;;  %v1312_v4 = vmul.f32 %v4664_v48, %v1284_v29  ;;  %v5366_v48 = vpack.c.bf16 %v4437_v49, %v4445_v52  ;;  %v3955_v49 = vld [vmem:[%s5281_s9] sm:$0xff]  }
 0x2e0   : > { %v1311_v45 = vmul.f32 %v1282_v59, %v4667_v51  ;;  %3571 = vmatpush3.bf16.msra.mxu0 %v3955_v49 }
 0x2e1   : > { %3632 = vmatprep.subr.bf16.mxu0 %v5363_v15 }
 0x2e2   : > { %3503 = vmatprep.mubr.msk.f32.mxu1 %vm1319_vm7, %v1311_v45 }
 0x2e3   : > { %3504 = vmatmul.mubr.msk.f32.gmra.mrb[28].mxu1 %vm1319_vm7, %v1312_v4 }
 0x2e4   : > { %3542 = vmatprep.mubr.msk.bf16.mxu1 %vm4065_vm5, %v5363_v15 }
 0x2e7   : > { %3543 = vmatmul.mubr.msk.bf16.vlgmr.msra.gmra.mrb[32].mxu1 %vm1629_vm6, %v5364_v40 }
 0x2e8   : > { %3546 = vmatprep.mubr.msk.bf16.mxu1 %vm4065_vm5, %v5363_v15 }
 0x2ef   : > { %3547 = vmatmul.mubr.msk.bf16.gmra.mrb[36].mxu1 %vm1629_vm6, %v5365_v43 }
 0x2f0   : > { %3550 = vmatprep.mubr.msk.bf16.mxu1 %vm4065_vm5, %v5363_v15 }
 0x2f7   : > { %3551 = vmatmul.mubr.msk.bf16.gmra.mrb[40].mxu1 %vm1629_vm6, %v5366_v48 }
 0x2f8   : > { %3554 = vmatprep.mubr.msk.bf16.mxu1 %vm4065_vm5, %v5363_v15 }
 0x2ff   : > { %3555 = vmatmul.mubr.msk.bf16.gmra.mrb[44].mxu1 %vm1629_vm6, %v5367_v35 }
 0x300   : > { %3558 = vmatprep.mubr.msk.bf16.mxu1 %vm4065_vm5, %v5363_v15 }
 0x307   : > { %3559 = vmatmul.mubr.msk.bf16.gmra.mrb[48].mxu1 %vm1629_vm6, %v5368_v37 }
 0x308   : > { %3562 = vmatprep.mubr.msk.bf16.mxu1 %vm4065_vm5, %v5363_v15 }
 0x30f   : > { %3563 = vmatmul.mubr.msk.bf16.gmra.mrb[52].mxu1 %vm1629_vm6, %v5369_v41 }
 0x310   : > { %3566 = vmatprep.mubr.msk.bf16.mxu1 %vm4065_vm5, %v5363_v15 }
 0x317   : > { %3567 = vmatmul.mubr.msk.bf16.gmra.mrb[56].mxu1 %vm1629_vm6, %v5370_v44 }
 0x318   : > { %3604 = vmatprep.mubr.msk.bf16.mxu1 %vm4065_vm5, %v5363_v15 }
 0x39e   : > { %v4779_v52 = vpop.f32.mrb[16].mxu1 }
 0x39f   : > { %v1498_v57 = vmul.f32 %v4779_v52, %v4779_v52  ;;  %v4783_v60 = vpop.f32.mrb[17].mxu1 }
 0x3a0   : > { %v1497_v34 = vmul.f32 %v4783_v60, %v4783_v60 }
 0x3a1   : > { %v1514_v36 = vsel %vm662_vm0, %v1498_v57, 0.0 }
 0x3a2   : > { %1515 = vadd.xlane.f32.xlu1 %v1514_v36  ;;  %v4788_v3 = vpop.f32.mrb[18].mxu1  ;;  %v1511_v11 = vsel %vm662_vm0, %v1497_v34, 0.0 }
 0x3a3   : > { %1512 = vadd.xlane.f32.xlu0 %v1511_v11  ;;  %v4791_v23 = vpop.f32.mrb[19].mxu1  ;;  %v1500_v51 = vmul.f32 %v4788_v3, %v4788_v3 }
 0x3a4   : > { %v1499_v28 = vmul.f32 %v4791_v23, %v4791_v23 }
 0x3a5   : > { %v1520_v2 = vsel %vm662_vm0, %v1500_v51, 0.0 }
 0x3a6   : > { %v4797_v46 = vpop.f32.mrb[20].mxu1  ;;  %v1517_v5 = vsel %vm662_vm0, %v1499_v28, 0.0 }
 0x3a7   : > { %1518 = vadd.xlane.f32.xlu0 %v1517_v5  ;;  %v4800_v30 = vpop.f32.mrb[21].mxu1  ;;  %v1502_v0 = vmul.f32 %v4797_v46, %v4797_v46 }
 0x3a8   : > { %v1501_v32 = vmul.f32 %v4800_v30, %v4800_v30 }
 0x3a9   : > { %v1526_v17 = vsel %vm662_vm0, %v1502_v0, 0.0 }
 0x3aa   : > { %v4806_v62 = vpop.f32.mrb[22].mxu1  ;;  %v1523_v21 = vsel %vm662_vm0, %v1501_v32, 0.0 }
 0x3ab   : > { %1521 = vadd.xlane.f32.xlu0 %v1520_v2  ;;  %1524 = vadd.xlane.f32.xlu1 %v1523_v21  ;;  %v4810_v47 = vpop.f32.mrb[23].mxu1  ;;  %v1504_v19 = vmul.f32 %v4806_v62, %v4806_v62 }
 0x3ac   : > { %v1503_v53 = vmul.f32 %v4810_v47, %v4810_v47 }
 0x3ad   : > { %v1532_v4 = vsel %vm662_vm0, %v1504_v19, 0.0 }
 0x3ae   : > { %v4816_v39 = vpop.f32.mrb[24].mxu1  ;;  %v1529_v38 = vsel %vm662_vm0, %v1503_v53, 0.0 }
 0x3af   : > { %1527 = vadd.xlane.f32.xlu0 %v1526_v17  ;;  %1530 = vadd.xlane.f32.xlu1 %v1529_v38  ;;  %v4820_v55 = vpop.f32.mrb[25].mxu1  ;;  %v1506_v59 = vmul.f32 %v4816_v39, %v4816_v39 }
 0x3b0   : > { %v1505_v29 = vmul.f32 %v4820_v55, %v4820_v55 }
 0x3b1   : > { %v1538_v41 = vsel %vm662_vm0, %v1506_v59, 0.0 }
 0x3b2   : > { %v4826_v45 = vpop.f32.mrb[26].mxu1  ;;  %v1535_v40 = vsel %vm662_vm0, %v1505_v29, 0.0 }
 0x3b3   : > { %1533 = vadd.xlane.f32.xlu0 %v1532_v4  ;;  %1536 = vadd.xlane.f32.xlu1 %v1535_v40  ;;  %v4830_v43 = vpop.f32.mrb[27].mxu1  ;;  %v1508_v35 = vmul.f32 %v4826_v45, %v4826_v45 }
 0x3b4   : > { %v1507_v48 = vmul.f32 %v4830_v43, %v4830_v43 }
 0x3b5   : > { %v1544_v11 = vsel %vm662_vm0, %v1508_v35, 0.0 }
 0x3b6   : > { %v4836_v37 = vpop.f32.mrb[28].mxu1  ;;  %v1541_v44 = vsel %vm662_vm0, %v1507_v48, 0.0 }
 0x3b7   : > { %1539 = vadd.xlane.f32.xlu0 %v1538_v41  ;;  %1542 = vadd.xlane.f32.xlu1 %v1541_v44  ;;  %v4840_v49 = vpop.f32.mrb[29].mxu1  ;;  %v1510_v34 = vmul.f32 %v4836_v37, %v4836_v37 }
 0x3b8   : > { %v1509_v57 = vmul.f32 %v4840_v49, %v4840_v49 }
 0x3b9   : > { %v1550_v21 = vsel %vm662_vm0, %v1510_v34, 0.0 }
 0x3ba   : > { %v1807_v36 = vpop.f32.mrb[32].mxu1  ;;  %v1547_v28 = vsel %vm662_vm0, %v1509_v57, 0.0 }
 0x3bb   : > { %v4849_v51 = vadd.f32 %v1807_v36, %v4670_v56  ;;  %1545 = vadd.xlane.f32.xlu0 %v1544_v11  ;;  %v3544_v5 = vpop.f32.mrb[33].mxu1  ;;  %1548 = vadd.xlane.f32.xlu1 %v1547_v28 }
 0x3bc   : > { %v1810_v32 = vpop.f32.mrb[34].mxu1 }
 0x3bd   : > { %v4852_v0 = vadd.f32 %v1810_v32, %v4672_v63  ;;  %v3545_v2 = vpop.f32.mrb[35].mxu1 }
 0x3bf   : > { %1551 = vadd.xlane.f32.xlu0 %v1550_v21 }
 0x3c2   : > { %v1815_v53 = vpop.f32.mrb[36].mxu1 }
 0x3c3   : > { %v4856_v19 = vadd.f32 %v1815_v53, %v4674_v9  ;;  %v3548_v17 = vpop.f32.mrb[37].mxu1 }
 0x3c4   : > { %v1818_v38 = vpop.f32.mrb[38].mxu1 }
 0x3c5   : > { %v4859_v56 = vadd.f32 %v1818_v38, %v4676_v27  ;;  %v3549_v29 = vpop.f32.mrb[39].mxu1 }
 0x3ca   : > { %v1823_v59 = vpop.f32.mrb[40].mxu1 }
 0x3cb   : > { %v4862_v4 = vadd.f32 %v1823_v59, %v4678_v31  ;;  %v3552_v63 = vpop.f32.mrb[41].mxu1 }
 0x3cc   : > { %v1826_v40 = vpop.f32.mrb[42].mxu1 }
 0x3cd   : > { %v4865_v48 = vadd.f32 %v1826_v40, %v4680_v33  ;;  %v3553_v35 = vpop.f32.mrb[43].mxu1 }
 0x3d2   : > { %v1831_v41 = vpop.f32.mrb[44].mxu1 }
 0x3d3   : > { %v4868_v9 = vadd.f32 %v1831_v41, %v4682_v25  ;;  %v3556_v44 = vpop.f32.mrb[45].mxu1 }
 0x3d4   : > { %v1834_v57 = vpop.f32.mrb[46].mxu1 }
 0x3d5   : > { %v4871_v27 = vadd.f32 %v1834_v57, %v4684_v7  ;;  %v3557_v34 = vpop.f32.mrb[47].mxu1 }
 0x3da   : > { %v1839_v36 = vpop.f32.mrb[48].mxu1 }
 0x3db   : > { %v4874_v31 = vadd.f32 %v1839_v36, %v4686_v13  ;;  %v3560_v11 = vpop.f32.mrb[49].mxu1 }
 0x3dc   : > { %v1842_v28 = vpop.f32.mrb[50].mxu1 }
 0x3dd   : > { %v4877_v33 = vadd.f32 %v1842_v28, %v4688_v58  ;;  %v3561_v5 = vpop.f32.mrb[51].mxu1 }
 0x3e2   : > { %v1847_v32 = vpop.f32.mrb[52].mxu1 }
 0x3e3   : > { %v4880_v25 = vadd.f32 %v1847_v32, %v4690_v61  ;;  %v3564_v2 = vpop.f32.mrb[53].mxu1 }
 0x3e4   : > { %v1850_v21 = vpop.f32.mrb[54].mxu1 }
 0x3e5   : > { %v4883_v7 = vadd.f32 %v1850_v21, %v4692_v50  ;;  %v3565_v53 = vpop.f32.mrb[55].mxu1  ;;  %v3956_v50 = vld [vmem:[%s5282_s10] sm:$0xff]  }
 0x3e6   : > { %3601 = vmatpush3.bf16.msra.mxu1 %v3956_v50 }
 0x3e7   : > { %3602 = vmatprep.subr.bf16.mxu1 %v5363_v15 }
 0x3ea   : > { %v1855_v17 = vpop.f32.mrb[56].mxu1 }
 0x3eb   : > { %v4886_v13 = vadd.f32 %v1855_v17, %v4694_v54  ;;  %v3568_v38 = vpop.f32.mrb[57].mxu1  ;;  %v3957_v54 = vld [vmem:[%s5282_s10 + $0x8] sm:$0xff]  }
 0x3ec   : > { %v1858_v29 = vpop.f32.mrb[58].mxu1  ;;  %3603 = vmatpush3.bf16.msra.mxu1 %v3957_v54 }
 0x3ed   : > { %v4889_v58 = vadd.f32 %v1858_v29, %v4696_v42  ;;  %v3569_v59 = vpop.f32.mrb[59].mxu1  ;;  %3664 = vmatprep.subr.bf16.mxu1 %v5363_v15 }
 0x3ee   : > { %2547 = vxpose.xlu1.b32.start [1/14] (short) (narrow) %v4234_v1, 16  ;;  %v5371_v1 = vld [vmem:[#allocation10_spill] sm:$0xff] }
 0x3f2   : > { %2548 = vxpose.xlu1.b32.cont [2/14] (short) (narrow) %v4257_v6, 16  ;;  %v5372_v6 = vld [vmem:[#allocation12_spill] sm:$0xff] }
 0x3f6   : > { %2549 = vxpose.xlu1.b32.cont [3/14] (short) (narrow) %v4269_v8, 16 }
 0x3fa   : > { %2550 = vxpose.xlu1.b32.cont [4/14] (short) (narrow) %v4278_v10, 16 }
 0x3fe   : > { %2551 = vxpose.xlu1.b32.cont [5/14] (short) (narrow) %v4290_v12, 16 }
 0x402   : > { %2552 = vxpose.xlu1.b32.cont [6/14] (short) (narrow) %v4302_v14, 16 }
 0x406   : > { %2553 = vxpose.xlu1.b32.cont [7/14] (short) (narrow) %v4313_v16, 16 }
 0x40a   : > { %2554 = vxpose.xlu1.b32.cont [8/14] (short) (narrow) %v4330_v18, 16 }
 0x40e   : > { %2555 = vxpose.xlu1.b32.cont [9/14] (short) (narrow) %v4338_v20, 16 }
 0x412   : > { %2556 = vxpose.xlu1.b32.cont [10/14] (short) (narrow) %v4352_v22, 16 }
 0x416   : > { %2557 = vxpose.xlu1.b32.cont [11/14] (short) (narrow) %v4360_v24, 16 }
 0x41a   : > { %2558 = vxpose.xlu1.b32.cont [12/14] (short) (narrow) %v4374_v26, 16 }
 0x41e   : > { %2559 = vxpose.xlu1.b32.cont [13/14] (short) (narrow) %v5371_v1, 16 }
 0x422   : > { %2560 = vxpose.xlu1.b32.end [14/14] (short) (narrow) %v5372_v6, 16 }
 0x42f   : > { %v1516_v8 = vpop.xlane.xlu1 %1515 }
 0x430   : > { %v1554_v10 = vmax.f32 %v1516_v8, 1e-24  ;;  %v1513_v12 = vpop.xlane.xlu0 %1512 }
 0x431   : > { %v1553_v14 = vmax.f32 %v1513_v12, 1e-24 }
 0x432   : > { %3968 = vrsqrt.f32 %v1554_v10 }
 0x433   : > { %3970 = vrsqrt.f32 %v1553_v14 }
 0x434   : > { %v1519_v16 = vpop.xlane.xlu0 %1518 }
 0x435   : > { %v1555_v18 = vmax.f32 %v1519_v16, 1e-24 }
 0x437   : > { %3972 = vrsqrt.f32 %v1555_v18 }
 0x438   : > { %v1525_v42 = vpop.xlane.xlu1 %1524  ;;  %v1522_v20 = vpop.xlane.xlu0 %1521 }
 0x439   : > { %v1556_v61 = vmax.f32 %v1522_v20, 1e-24  ;;  %v1557_v22 = vmax.f32 %v1525_v42, 1e-24 }
 0x43b   : > { %3974 = vrsqrt.f32 %v1556_v61 }
 0x43c   : > { %v3969_v24 = vpop.eup %3968  ;;  %v1531_v26 = vpop.xlane.xlu1 %1530  ;;  %3976 = vrsqrt.f32 %v1557_v22 }
 0x43d   : > { %v1528_v63 = vpop.xlane.xlu0 %1527  ;;  %v3971_v40 = vpop.eup %3970  ;;  %v1582_v35 = vmul.f32 %v3969_v24, %v4779_v52  ;;  %v1559_v57 = vmax.f32 %v1531_v26, 1e-24 }
 0x43e   : > { %v1558_v41 = vmax.f32 %v1528_v63, 1e-24  ;;  %v1581_v44 = vmul.f32 %v3971_v40, %v4783_v60 }
 0x440   : > { %v1862_v34 = vpack.c.bf16 %v1582_v35, %v1581_v44  ;;  %3978 = vrsqrt.f32 %v1558_v41  ;;  %v1537_v36 = vpop.xlane.xlu1 %1536 }
 0x441   : > { %v1534_v11 = vpop.xlane.xlu0 %1533  ;;  %3980 = vrsqrt.f32 %v1559_v57  ;;  %v1561_v5 = vmax.f32 %v1537_v36, 1e-24  ;;  %v3973_v32 = vpop.eup %3972 }
 0x442   : > { %v1560_v28 = vmax.f32 %v1534_v11, 1e-24  ;;  %3573 = vmatmul.mubr.msk.bf16.vlgmr.msra.gmra.mrb[56].mxu0 %vm662_vm0, %v1862_v34  ;;  %v1583_v17 = vmul.f32 %v3973_v32, %v4791_v23 }
 0x443   : > { %3576 = vmatprep.mubr.msk.bf16.mxu0 %vm4065_vm5, %v5363_v15 }
 0x444   : > { %3982 = vrsqrt.f32 %v1560_v28  ;;  %v1543_v52 = vpop.xlane.xlu1 %1542  ;;  %v2002_v28 = vld [vmem:[%s5374_s3 + $0x8] sm:$0xff] }
 0x445   : > { %v1540_v2 = vpop.xlane.xlu0 %1539  ;;  %v3975_v60 = vpop.eup %3974  ;;  %3984 = vrsqrt.f32 %v1561_v5  ;;  %v1563_v53 = vmax.f32 %v1543_v52, 1e-24 }
 0x446   : > { %v1562_v21 = vmax.f32 %v1540_v2, 1e-24  ;;  %v1584_v38 = vmul.f32 %v3975_v60, %v4788_v3  ;;  %v3977_v29 = vpop.eup %3976 }
 0x447   : > { %v1585_v10 = vmul.f32 %v3977_v29, %v4800_v30 }
 0x448   : > { %3986 = vrsqrt.f32 %v1562_v21  ;;  %v1549_v59 = vpop.xlane.xlu1 %1548  ;;  %v1863_v6 = vpack.c.bf16 %v1584_v38, %v1583_v17  ;;  %v2003_v38 = vld [vmem:[%s5374_s3 + $0x10] sm:$0xff] }
 0x449   : > { %v1546_v50 = vpop.xlane.xlu0 %1545  ;;  %v1565_v54 = vmax.f32 %v1549_v59, 1e-24  ;;  %3988 = vrsqrt.f32 %v1563_v53 }
 0x44a   : > { %v1564_v1 = vmax.f32 %v1546_v50, 1e-24  ;;  %v3979_v8 = vpop.eup %3978  ;;  %3577 = vmatmul.mubr.msk.bf16.gmra.mrb[60].mxu0 %vm662_vm0, %v1863_v6  ;;  %v2004_v50 = vld [vmem:[%s5374_s3 + $0x18] sm:$0xff] }
 0x44b   : > { %v1586_v12 = vmul.f32 %v3979_v8, %v4797_v46  ;;  %v3981_v14 = vpop.eup %3980  ;;  %3580 = vmatprep.mubr.msk.bf16.mxu0 %vm4065_vm5, %v5363_v15 }
 0x44c   : > { %3990 = vrsqrt.f32 %v1564_v1  ;;  %v1587_v42 = vmul.f32 %v3981_v14, %v4810_v47 }
 0x44d   : > { %v1552_v23 = vpop.xlane.xlu0 %1551  ;;  %3992 = vrsqrt.f32 %v1565_v54  ;;  %v1864_v16 = vpack.c.bf16 %v1586_v12, %v1585_v10 }
 0x44e   : > { %v1566_v3 = vmax.f32 %v1552_v23, 1e-24  ;;  %v3983_v18 = vpop.eup %3982 }
 0x44f   : > { %v1588_v20 = vmul.f32 %v3983_v18, %v4806_v62  ;;  %v3985_v61 = vpop.eup %3984 }
 0x450   : > { %3994 = vrsqrt.f32 %v1566_v3  ;;  %v1589_v46 = vmul.f32 %v3985_v61, %v4820_v55  ;;  %v3958_v55 = vld [vmem:[%s5284_s12] sm:$0xff]  }
 0x451   : > { %v1865_v22 = vpack.c.bf16 %v1588_v20, %v1587_v42  ;;  %3633 = vmatpush3.bf16.msra.mxu0 %v3958_v55 }
 0x452   : > { %v3987_v30 = vpop.eup %3986  ;;  %3581 = vmatmul.mubr.msk.bf16.gmra.mrb[64].mxu0 %vm662_vm0, %v1864_v16  ;;  %3634 = vmatprep.subr.bf16.mxu0 %v5363_v15 }
 0x453   : > { %v1590_v24 = vmul.f32 %v3987_v30, %v4816_v39  ;;  %v3989_v26 = vpop.eup %3988  ;;  %3584 = vmatprep.mubr.msk.bf16.mxu0 %vm4065_vm5, %v5363_v15 }
 0x454   : > { %v1591_v47 = vmul.f32 %v3989_v26, %v4830_v43 }
 0x455   : > { %v1866_v63 = vpack.c.bf16 %v1590_v24, %v1589_v46 }
 0x456   : > { %v3991_v40 = vpop.eup %3990 }
 0x457   : > { %v3993_v35 = vpop.eup %3992  ;;  %v1592_v62 = vmul.f32 %v3991_v40, %v4826_v45  ;;  %v3959_v45 = vld [vmem:[%s5284_s12 + $0x8] sm:$0xff]  }
 0x458   : > { %v1593_v57 = vmul.f32 %v3993_v35, %v4840_v49  ;;  %3635 = vmatpush3.bf16.msra.mxu0 %v3959_v45 }
 0x459   : > { %v1867_v44 = vpack.c.bf16 %v1592_v62, %v1591_v47 }
 0x45a   : > { %v3995_v41 = vpop.eup %3994  ;;  %3585 = vmatmul.mubr.msk.bf16.gmra.mrb[68].mxu0 %vm662_vm0, %v1865_v22 }
 0x45b   : > { %v1594_v34 = vmul.f32 %v3995_v41, %v4836_v37  ;;  %3588 = vmatprep.mubr.msk.bf16.mxu0 %vm4065_vm5, %v5363_v15  ;;  %v2001_v37 = vld [vmem:[%s5373_s23] sm:$0xff]  ;;  %s3235_s23 = sshll.u32 %s4198_s2, 8  ;;  %s5231_s2 = scalar_lea.sflag [#allocation3], %s621_s29 }
 0x45d   : > { %v1868_v39 = vpack.c.bf16 %v1594_v34, %v1593_v57 }
 0x462   : > { %3589 = vmatmul.mubr.msk.bf16.gmra.mrb[72].mxu0 %vm662_vm0, %v1866_v63 }
 0x463   : > { %3592 = vmatprep.mubr.msk.bf16.mxu0 %vm4065_vm5, %v5363_v15 }
 0x46a   : > { %3593 = vmatmul.mubr.msk.bf16.gmra.mrb[76].mxu0 %vm662_vm0, %v1867_v44 }
 0x46b   : > { %3596 = vmatprep.mubr.msk.bf16.mxu0 %vm4065_vm5, %v5363_v15 }
 0x472   : > { %3597 = vmatmul.mubr.msk.bf16.gmra.mrb[80].mxu0 %vm662_vm0, %v1868_v39 }
 0x473   : > { %3636 = vmatprep.mubr.msk.bf16.mxu0 %vm4065_vm5, %v5363_v15 }
 0x515   : > { %v1932_v43 = vpop.f32.mrb[56].mxu0 }
 0x516   : > { %v1987_v49 = vadd.f32 %v1932_v43, %v4849_v51  ;;  %v3574_v36 = vpop.f32.mrb[57].mxu0 }
 0x517   : > { %v1935_v11 = vpop.f32.mrb[58].mxu0 }
 0x518   : > { %v2008_v5 = vadd.f32 %v2001_v37, %v1987_v49  ;;  %v1988_v32 = vadd.f32 %v1935_v11, %v4852_v0  ;;  %v3575_v52 = vpop.f32.mrb[59].mxu0 }
 0x51a   : > { %v2009_v2 = vadd.f32 %v2002_v28, %v1988_v32  ;;  %v2022_v21 = vmax.f32 %v2008_v5, 0.0 }
 0x51c   : > { %v2023_v60 = vmax.f32 %v2009_v2, 0.0 }
 0x51d   : > { %v1940_v17 = vpop.f32.mrb[60].mxu0 }
 0x51e   : > { %v2036_v53 = vpack.c.bf16 %v2023_v60, %v2022_v21  ;;  %v1989_v51 = vadd.f32 %v1940_v17, %v4856_v19  ;;  %v3578_v29 = vpop.f32.mrb[61].mxu0  ;;  %v2005_v19 = vld [vmem:[%s5374_s3 + $0x20] sm:$0xff] }
 0x51f   : > { %v1943_v59 = vpop.f32.mrb[62].mxu0 }
 0x520   : > { %3605 = vmatmul.mubr.msk.bf16.vlgmr.msra.gmra.mrb[60].mxu1 %vm1629_vm6, %v2036_v53  ;;  %v2010_v0 = vadd.f32 %v2003_v38, %v1989_v51  ;;  %v1990_v54 = vadd.f32 %v1943_v59, %v4859_v56  ;;  %v3579_v1 = vpop.f32.mrb[63].mxu0  ;;  %v2006_v56 = vld [vmem:[%s5374_s3 + $0x28] sm:$0xff] }
 0x521   : > { %3608 = vmatprep.mubr.msk.bf16.mxu1 %vm4065_vm5, %v5363_v15 }
 0x522   : > { %v2011_v6 = vadd.f32 %v2004_v50, %v1990_v54  ;;  %v2024_v8 = vmax.f32 %v2010_v0, 0.0 }
 0x524   : > { %v2025_v10 = vmax.f32 %v2011_v6, 0.0 }
 0x525   : > { %v1948_v12 = vpop.f32.mrb[64].mxu0 }
 0x526   : > { %v2037_v14 = vpack.c.bf16 %v2025_v10, %v2024_v8  ;;  %v1991_v23 = vadd.f32 %v1948_v12, %v4862_v4  ;;  %v3582_v3 = vpop.f32.mrb[65].mxu0  ;;  %v2007_v4 = vld [vmem:[%s5374_s3 + $0x30] sm:$0xff]  ;;  %v5021_v8 = vld [vmem:[%s5283_s11] ss:$0 sm:$0xff] }
 0x527   : > { %v1951_v16 = vpop.f32.mrb[66].mxu0 }
 0x528   : > { %v2012_v18 = vadd.f32 %v2005_v19, %v1991_v23  ;;  %v1992_v42 = vadd.f32 %v1951_v16, %v4865_v48  ;;  %v3583_v20 = vpop.f32.mrb[67].mxu0  ;;  %3609 = vmatmul.mubr.msk.bf16.gmra.mrb[64].mxu1 %vm1629_vm6, %v2037_v14 }
 0x529   : > { %3612 = vmatprep.mubr.msk.bf16.mxu1 %vm4065_vm5, %v5363_v15 }
 0x52a   : > { %v2013_v61 = vadd.f32 %v2006_v56, %v1992_v42  ;;  %v2026_v22 = vmax.f32 %v2012_v18, 0.0 }
 0x52c   : > { %v2027_v30 = vmax.f32 %v2013_v61, 0.0 }
 0x52d   : > { %v1956_v46 = vpop.f32.mrb[68].mxu0 }
 0x52e   : > { %v2038_v24 = vpack.c.bf16 %v2027_v30, %v2026_v22  ;;  %v1993_v26 = vadd.f32 %v1956_v46, %v4868_v9  ;;  %v3586_v63 = vpop.f32.mrb[69].mxu0 }
 0x52f   : > { %v1959_v40 = vpop.f32.mrb[70].mxu0 }
 0x530   : > { %v2014_v48 = vadd.f32 %v2007_v4, %v1993_v26  ;;  %v1994_v35 = vadd.f32 %v1959_v40, %v4871_v27  ;;  %v3587_v47 = vpop.f32.mrb[71].mxu0  ;;  %3613 = vmatmul.mubr.msk.bf16.gmra.mrb[68].mxu1 %vm1629_vm6, %v2038_v24 }
 0x531   : > { %3616 = vmatprep.mubr.msk.bf16.mxu1 %vm4065_vm5, %v5363_v15 }
 0x532   : > { %v2015_v62 = vadd.f32 %v2001_v37, %v1994_v35  ;;  %v2028_v41 = vmax.f32 %v2014_v48, 0.0 }
 0x534   : > { %v2029_v44 = vmax.f32 %v2015_v62, 0.0 }
 0x535   : > { %v1964_v57 = vpop.f32.mrb[72].mxu0 }
 0x536   : > { %v2039_v34 = vpack.c.bf16 %v2029_v44, %v2028_v41  ;;  %v1995_v39 = vadd.f32 %v1964_v57, %v4874_v31  ;;  %v3590_v55 = vpop.f32.mrb[73].mxu0 }
 0x537   : > { %v1967_v9 = vpop.f32.mrb[74].mxu0 }
 0x538   : > { %v2016_v45 = vadd.f32 %v2002_v28, %v1995_v39  ;;  %v1996_v43 = vadd.f32 %v1967_v9, %v4877_v33  ;;  %v3591_v49 = vpop.f32.mrb[75].mxu0  ;;  %3617 = vmatmul.mubr.msk.bf16.gmra.mrb[72].mxu1 %vm1629_vm6, %v2039_v34 }
 0x539   : > { %3620 = vmatprep.mubr.msk.bf16.mxu1 %vm4065_vm5, %v5363_v15 }
 0x53a   : > { %v2017_v27 = vadd.f32 %v2003_v38, %v1996_v43  ;;  %v2030_v36 = vmax.f32 %v2016_v45, 0.0 }
 0x53c   : > { %v2031_v37 = vmax.f32 %v2017_v27, 0.0 }
 0x53d   : > { %v1972_v11 = vpop.f32.mrb[76].mxu0 }
 0x53e   : > { %v2040_v5 = vpack.c.bf16 %v2031_v37, %v2030_v36  ;;  %v1997_v32 = vadd.f32 %v1972_v11, %v4880_v25  ;;  %v3594_v52 = vpop.f32.mrb[77].mxu0 }
 0x53f   : > { %v1975_v31 = vpop.f32.mrb[78].mxu0 }
 0x540   : > { %v2018_v2 = vadd.f32 %v2004_v50, %v1997_v32  ;;  %v1998_v28 = vadd.f32 %v1975_v31, %v4883_v7  ;;  %v3595_v21 = vpop.f32.mrb[79].mxu0  ;;  %3621 = vmatmul.mubr.msk.bf16.gmra.mrb[76].mxu1 %vm1629_vm6, %v2040_v5 }
 0x541   : > { %3624 = vmatprep.mubr.msk.bf16.mxu1 %vm4065_vm5, %v5363_v15 }
 0x542   : > { %v2019_v33 = vadd.f32 %v2005_v19, %v1998_v28  ;;  %v2032_v60 = vmax.f32 %v2018_v2, 0.0 }
 0x544   : > { %v2033_v53 = vmax.f32 %v2019_v33, 0.0 }
 0x545   : > { %v1980_v17 = vpop.f32.mrb[80].mxu0 }
 0x546   : > { %v2041_v38 = vpack.c.bf16 %v2033_v53, %v2032_v60  ;;  %v1999_v51 = vadd.f32 %v1980_v17, %v4886_v13  ;;  %v3598_v29 = vpop.f32.mrb[81].mxu0  ;;  %v3960_v13 = vld [vmem:[%s5286_s14] sm:$0xff]  }
 0x547   : > { %v1983_v25 = vpop.f32.mrb[82].mxu0  ;;  %3665 = vmatpush3.bf16.msra.mxu1 %v3960_v13 }
 0x548   : > { %v2020_v59 = vadd.f32 %v2006_v56, %v1999_v51  ;;  %v2000_v50 = vadd.f32 %v1983_v25, %v4889_v58  ;;  %v3599_v0 = vpop.f32.mrb[83].mxu0  ;;  %3625 = vmatmul.mubr.msk.bf16.gmra.mrb[80].mxu1 %vm1629_vm6, %v2041_v38  ;;  %3666 = vmatprep.subr.bf16.mxu1 %v5363_v15  ;;  %v3961_v58 = vld [vmem:[%s5286_s14 + $0x8] sm:$0xff]  }
 0x549   : > { %3628 = vmatprep.mubr.msk.bf16.mxu1 %vm4065_vm5, %v5363_v15 }
 0x54a   : > { %v2021_v7 = vadd.f32 %v2007_v4, %v2000_v50  ;;  %v2034_v54 = vmax.f32 %v2020_v59, 0.0 }
 0x54b   : > { %3667 = vmatpush3.bf16.msra.mxu1 %v3961_v58 }
 0x54c   : > { %v2035_v1 = vmax.f32 %v2021_v7, 0.0 }
 0x54e   : > { %v2042_v6 = vpack.c.bf16 %v2035_v1, %v2034_v54 }
 0x550   : > { %3629 = vmatmul.mubr.msk.bf16.gmra.mrb[84].mxu1 %vm1629_vm6, %v2042_v6 }
 0x551   : > { %3668 = vmatprep.mubr.msk.bf16.mxu1 %vm4065_vm5, %v5363_v15 }
 0x5f3   : > { %v2121_v10 = vpop.f32.mrb[60].mxu1 }
 0x5f4   : > { %v2122_v12 = vadd.f32 %v5021_v8, %v2121_v10  ;;  %v3606_v19 = vpop.f32.mrb[61].mxu1 }
 0x5f5   : > { %v2124_v14 = vpop.f32.mrb[62].mxu1 }
 0x5f6   : > { %v2125_v23 = vadd.f32 %v5021_v8, %v2124_v14  ;;  %v3607_v3 = vpop.f32.mrb[63].mxu1  ;;  %v2176_v16 = vmax.f32 %v2122_v12, 0.0  ;;  %v5078_v12 = vld [vmem:[%s5285_s13] ss:$0 sm:$0xff] }
 0x5f8   : > { %v2177_v56 = vmax.f32 %v2125_v23, 0.0 }
 0x5fa   : > { %v5025_v18 = vpack.c.bf16 %v2177_v56, %v2176_v16 }
 0x5fb   : > { %v2129_v42 = vpop.f32.mrb[64].mxu1 }
 0x5fc   : > { %3637 = vmatmul.mubr.msk.bf16.vlgmr.msra.gmra.mrb[84].mxu0 %vm1629_vm6, %v5025_v18  ;;  %3837 = vmatprep.subr.bf16.mxu1 %v5025_v18  ;;  %v2130_v20 = vadd.f32 %v5021_v8, %v2129_v42  ;;  %v3610_v61 = vpop.f32.mrb[65].mxu1 }
 0x5fd   : > { %3640 = vmatprep.mubr.msk.bf16.mxu0 %vm4065_vm5, %v5363_v15  ;;  %v2132_v22 = vpop.f32.mrb[66].mxu1 }
 0x5fe   : > { %v2133_v30 = vadd.f32 %v5021_v8, %v2132_v22  ;;  %v3611_v46 = vpop.f32.mrb[67].mxu1  ;;  %v2178_v4 = vmax.f32 %v2130_v20, 0.0 }
 0x600   : > { %v2179_v24 = vmax.f32 %v2133_v30, 0.0 }
 0x602   : > { %v5034_v26 = vpack.c.bf16 %v2179_v24, %v2178_v4 }
 0x603   : > { %v2137_v63 = vpop.f32.mrb[68].mxu1 }
 0x604   : > { %v2138_v40 = vadd.f32 %v5021_v8, %v2137_v63  ;;  %v3614_v48 = vpop.f32.mrb[69].mxu1  ;;  %3641 = vmatmul.mubr.msk.bf16.gmra.mrb[88].mxu0 %vm1629_vm6, %v5034_v26 }
 0x605   : > { %v2140_v35 = vpop.f32.mrb[70].mxu1  ;;  %3644 = vmatprep.mubr.msk.bf16.mxu0 %vm4065_vm5, %v5363_v15 }
 0x606   : > { %v2141_v47 = vadd.f32 %v5021_v8, %v2140_v35  ;;  %v3615_v62 = vpop.f32.mrb[71].mxu1  ;;  %v2180_v41 = vmax.f32 %v2138_v40, 0.0 }
 0x608   : > { %v2181_v44 = vmax.f32 %v2141_v47, 0.0 }
 0x60a   : > { %v5042_v57 = vpack.c.bf16 %v2181_v44, %v2180_v41 }
 0x60b   : > { %v2145_v34 = vpop.f32.mrb[72].mxu1 }
 0x60c   : > { %v2146_v39 = vadd.f32 %v5021_v8, %v2145_v34  ;;  %v3618_v55 = vpop.f32.mrb[73].mxu1  ;;  %3645 = vmatmul.mubr.msk.bf16.gmra.mrb[92].mxu0 %vm1629_vm6, %v5042_v57 }
 0x60d   : > { %v2148_v9 = vpop.f32.mrb[74].mxu1  ;;  %3648 = vmatprep.mubr.msk.bf16.mxu0 %vm4065_vm5, %v5363_v15 }
 0x60e   : > { %v2149_v45 = vadd.f32 %v5021_v8, %v2148_v9  ;;  %v3619_v43 = vpop.f32.mrb[75].mxu1  ;;  %v2182_v49 = vmax.f32 %v2146_v39, 0.0 }
 0x610   : > { %v2183_v27 = vmax.f32 %v2149_v45, 0.0 }
 0x612   : > { %v5050_v36 = vpack.c.bf16 %v2183_v27, %v2182_v49 }
 0x613   : > { %v2153_v37 = vpop.f32.mrb[76].mxu1 }
 0x614   : > { %v2154_v11 = vadd.f32 %v5021_v8, %v2153_v37  ;;  %v3622_v5 = vpop.f32.mrb[77].mxu1  ;;  %3649 = vmatmul.mubr.msk.bf16.gmra.mrb[96].mxu0 %vm1629_vm6, %v5050_v36 }
 0x615   : > { %v2156_v32 = vpop.f32.mrb[78].mxu1  ;;  %3652 = vmatprep.mubr.msk.bf16.mxu0 %vm4065_vm5, %v5363_v15 }
 0x616   : > { %v2157_v52 = vadd.f32 %v5021_v8, %v2156_v32  ;;  %v3623_v31 = vpop.f32.mrb[79].mxu1  ;;  %v2184_v2 = vmax.f32 %v2154_v11, 0.0 }
 0x618   : > { %v2185_v28 = vmax.f32 %v2157_v52, 0.0 }
 0x61a   : > { %v5058_v21 = vpack.c.bf16 %v2185_v28, %v2184_v2 }
 0x61b   : > { %v2161_v33 = vpop.f32.mrb[80].mxu1 }
 0x61c   : > { %v2162_v60 = vadd.f32 %v5021_v8, %v2161_v33  ;;  %v3626_v53 = vpop.f32.mrb[81].mxu1  ;;  %3653 = vmatmul.mubr.msk.bf16.gmra.mrb[100].mxu0 %vm1629_vm6, %v5058_v21 }
 0x61d   : > { %v2164_v17 = vpop.f32.mrb[82].mxu1  ;;  %3656 = vmatprep.mubr.msk.bf16.mxu0 %vm4065_vm5, %v5363_v15 }
 0x61e   : > { %v2165_v38 = vadd.f32 %v5021_v8, %v2164_v17  ;;  %v3627_v51 = vpop.f32.mrb[83].mxu1  ;;  %v2186_v29 = vmax.f32 %v2162_v60, 0.0 }
 0x620   : > { %v2187_v25 = vmax.f32 %v2165_v38, 0.0 }
 0x622   : > { %v5066_v59 = vpack.c.bf16 %v2187_v25, %v2186_v29 }
 0x623   : > { %v2169_v50 = vpop.f32.mrb[84].mxu1 }
 0x624   : > { %v2170_v0 = vadd.f32 %v5021_v8, %v2169_v50  ;;  %v3630_v7 = vpop.f32.mrb[85].mxu1  ;;  %3657 = vmatmul.mubr.msk.bf16.gmra.mrb[104].mxu0 %vm1629_vm6, %v5066_v59 }
 0x625   : > { %v2172_v54 = vpop.f32.mrb[86].mxu1  ;;  %3660 = vmatprep.mubr.msk.bf16.mxu0 %vm4065_vm5, %v5363_v15 }
 0x626   : > { %v2173_v1 = vadd.f32 %v5021_v8, %v2172_v54  ;;  %v3631_v6 = vpop.f32.mrb[87].mxu1  ;;  %v2188_v13 = vmax.f32 %v2170_v0, 0.0 }
 0x628   : > { %v2189_v58 = vmax.f32 %v2173_v1, 0.0 }
 0x62a   : > { %v2196_v10 = vpack.c.bf16 %v2189_v58, %v2188_v13 }
 0x62c   : > { %3661 = vmatmul.mubr.msk.bf16.gmra.mrb[108].mxu0 %vm1629_vm6, %v2196_v10 }
 0x6cf   : > { %v2275_v19 = vpop.f32.mrb[84].mxu0 }
 0x6d0   : > { %v2276_v14 = vadd.f32 %v5078_v12, %v2275_v19  ;;  %v3638_v23 = vpop.f32.mrb[85].mxu0 }
 0x6d1   : > { %v2278_v3 = vpop.f32.mrb[86].mxu0 }
 0x6d2   : > { %v2279_v16 = vadd.f32 %v5078_v12, %v2278_v3  ;;  %v3639_v56 = vpop.f32.mrb[87].mxu0  ;;  %v2330_v8 = vmax.f32 %v2276_v14, 0.0  ;;  %v2563_v14 = vpop.trf.xlu1 }
 0x6d3   : > { %3724 = vmatprep.mubr.msk.f32.mxu0 %vm2635_vm8, %v2563_v14 }
 0x6d4   : > { %v2331_v42 = vmax.f32 %v2279_v16, 0.0 }
 0x6d6   : > { %v2344_v20 = vpack.c.bf16 %v2331_v42, %v2330_v8  ;;  %v5127_v23 = vpop.trf.xlu1 }
 0x6d7   : > { %v2283_v61 = vpop.f32.mrb[88].mxu0 }
 0x6d8   : > { %3669 = vmatmul.mubr.msk.bf16.vlgmr.msra.gmra.mrb[88].mxu1 %vm1629_vm6, %v2344_v20  ;;  %v2284_v22 = vadd.f32 %v5078_v12, %v2283_v61  ;;  %v3642_v30 = vpop.f32.mrb[89].mxu0 }
 0x6d9   : > { %3839 = vmatpush3.bf16.msra.mxu1 %v5025_v18  ;;  %3672 = vmatprep.mubr.msk.bf16.mxu1 %vm4065_vm5, %v5363_v15  ;;  %v2286_v46 = vpop.f32.mrb[90].mxu0 }
 0x6da   : > { %3841 = vmatprep.subr.bf16.mxu1 %v5034_v26  ;;  %v2287_v4 = vadd.f32 %v5078_v12, %v2286_v46  ;;  %v3643_v24 = vpop.f32.mrb[91].mxu0  ;;  %v2332_v63 = vmax.f32 %v2284_v22, 0.0 }
 0x6dc   : > { %v2333_v40 = vmax.f32 %v2287_v4, 0.0 }
 0x6dd   : > { %3843 = vmatpush3.bf16.msra.mxu1 %v5034_v26 }
 0x6de   : > { %3845 = vmatprep.subr.bf16.mxu1 %v5042_v57  ;;  %v2345_v48 = vpack.c.bf16 %v2333_v40, %v2332_v63 }
 0x6df   : > { %v2291_v35 = vpop.f32.mrb[92].mxu0 }
 0x6e0   : > { %v2292_v47 = vadd.f32 %v5078_v12, %v2291_v35  ;;  %v3646_v18 = vpop.f32.mrb[93].mxu0  ;;  %3673 = vmatmul.mubr.msk.bf16.gmra.mrb[92].mxu1 %vm1629_vm6, %v2345_v48 }
 0x6e1   : > { %3847 = vmatpush3.bf16.msra.mxu1 %v5042_v57  ;;  %v2294_v62 = vpop.f32.mrb[94].mxu0  ;;  %3676 = vmatprep.mubr.msk.bf16.mxu1 %vm4065_vm5, %v5363_v15 }
 0x6e2   : > { %v2295_v41 = vadd.f32 %v5078_v12, %v2294_v62  ;;  %3849 = vmatprep.subr.bf16.mxu1 %v5050_v36  ;;  %v3647_v26 = vpop.f32.mrb[95].mxu0  ;;  %v2334_v44 = vmax.f32 %v2292_v47, 0.0 }
 0x6e4   : > { %v2335_v34 = vmax.f32 %v2295_v41, 0.0 }
 0x6e5   : > { %3851 = vmatpush3.bf16.msra.mxu1 %v5050_v36 }
 0x6e6   : > { %v2346_v39 = vpack.c.bf16 %v2335_v34, %v2334_v44  ;;  %3853 = vmatprep.subr.bf16.mxu1 %v5058_v21 }
 0x6e7   : > { %v2299_v55 = vpop.f32.mrb[96].mxu0 }
 0x6e8   : > { %v2300_v9 = vadd.f32 %v5078_v12, %v2299_v55  ;;  %v3650_v57 = vpop.f32.mrb[97].mxu0  ;;  %3677 = vmatmul.mubr.msk.bf16.gmra.mrb[96].mxu1 %vm1629_vm6, %v2346_v39 }
 0x6e9   : > { %3855 = vmatpush3.bf16.msra.mxu1 %v5058_v21  ;;  %v2302_v45 = vpop.f32.mrb[98].mxu0  ;;  %3680 = vmatprep.mubr.msk.bf16.mxu1 %vm4065_vm5, %v5363_v15 }
 0x6ea   : > { %v2303_v43 = vadd.f32 %v5078_v12, %v2302_v45  ;;  %3857 = vmatprep.subr.bf16.mxu1 %v5066_v59  ;;  %v3651_v49 = vpop.f32.mrb[99].mxu0  ;;  %v2336_v27 = vmax.f32 %v2300_v9, 0.0 }
 0x6eb   : > { %v5375_v49 = vld [vmem:[#allocation14_spill] sm:$0xff] }
 0x6ec   : > { %v2337_v36 = vmax.f32 %v2303_v43, 0.0 }
 0x6ed   : > { %3859 = vmatpush3.bf16.msra.mxu1 %v5066_v59 }
 0x6ee   : > { %v2347_v37 = vpack.c.bf16 %v2337_v36, %v2336_v27  ;;  %3861 = vmatprep.subr.bf16.mxu1 %v2196_v10  ;;  %v5376_v36 = vld [vmem:[#allocation13_spill] sm:$0xff] }
 0x6ef   : > { %v2307_v11 = vpop.f32.mrb[100].mxu0 }
 0x6f0   : > { %v2308_v5 = vadd.f32 %v5078_v12, %v2307_v11  ;;  %v3654_v32 = vpop.f32.mrb[101].mxu0  ;;  %3681 = vmatmul.mubr.msk.bf16.gmra.mrb[100].mxu1 %vm1629_vm6, %v2347_v37 }
 0x6f1   : > { %3863 = vmatpush3.bf16.msra.mxu1 %v2196_v10  ;;  %v2310_v52 = vpop.f32.mrb[102].mxu0  ;;  %3684 = vmatprep.mubr.msk.bf16.mxu1 %vm4065_vm5, %v5363_v15 }
 0x6f2   : > { %v2311_v31 = vadd.f32 %v5078_v12, %v2310_v52  ;;  %v3655_v2 = vpop.f32.mrb[103].mxu0  ;;  %3766 = vmatprep.subr.bf16.mxu1 %v5363_v15  ;;  %v2338_v28 = vmax.f32 %v2308_v5, 0.0  ;;  %v5378_v52 = vld [vmem:[#allocation16_spill] sm:$0xff] }
 0x6f3   : > { %v5379_v2 = vld [vmem:[#allocation15_spill] sm:$0xff] }
 0x6f4   : > { %v2339_v21 = vmax.f32 %v2311_v31, 0.0 }
 0x6f6   : > { %v2348_v33 = vpack.c.bf16 %v2339_v21, %v2338_v28 }
 0x6f7   : > { %v2315_v60 = vpop.f32.mrb[104].mxu0 }
 0x6f8   : > { %v2316_v53 = vadd.f32 %v5078_v12, %v2315_v60  ;;  %v3658_v17 = vpop.f32.mrb[105].mxu0  ;;  %3685 = vmatmul.mubr.msk.bf16.gmra.mrb[104].mxu1 %vm1629_vm6, %v2348_v33 }
 0x6f9   : > { %v2318_v38 = vpop.f32.mrb[106].mxu0  ;;  %3688 = vmatprep.mubr.msk.bf16.mxu1 %vm4065_vm5, %v5363_v15 }
 0x6fa   : > { %v2319_v51 = vadd.f32 %v5078_v12, %v2318_v38  ;;  %v3659_v29 = vpop.f32.mrb[107].mxu0  ;;  %v2340_v25 = vmax.f32 %v2316_v53, 0.0  ;;  %v5380_v53 = vld [vmem:[#allocation18_spill] sm:$0xff]  ;;  %v5381_v38 = vld [vmem:[#allocation17_spill] sm:$0xff] }
 0x6fc   : > { %v2341_v59 = vmax.f32 %v2319_v51, 0.0 }
 0x6fe   : > { %v2349_v50 = vpack.c.bf16 %v2341_v59, %v2340_v25 }
 0x6ff   : > { %v2323_v0 = vpop.f32.mrb[108].mxu0 }
 0x700   : > { %v2324_v7 = vadd.f32 %v5078_v12, %v2323_v0  ;;  %v3662_v54 = vpop.f32.mrb[109].mxu0  ;;  %3689 = vmatmul.mubr.msk.bf16.gmra.mrb[108].mxu1 %vm1629_vm6, %v2349_v50  ;;  %v5382_v50 = vld [vmem:[#allocation20_spill] sm:$0xff] }
 0x701   : > { %v2326_v1 = vpop.f32.mrb[110].mxu0  ;;  %3692 = vmatprep.mubr.msk.bf16.mxu1 %vm4065_vm5, %v5363_v15 }
 0x702   : > { %v2327_v6 = vadd.f32 %v5078_v12, %v2326_v1  ;;  %v3663_v13 = vpop.f32.mrb[111].mxu0  ;;  %v2342_v58 = vmax.f32 %v2324_v7, 0.0  ;;  %v5383_v7 = vld [vmem:[#allocation19_spill] sm:$0xff] }
 0x704   : > { %v2343_v10 = vmax.f32 %v2327_v6, 0.0 }
 0x706   : > { %v2350_v19 = vpack.c.bf16 %v2343_v10, %v2342_v58  ;;  %v5384_v58 = vld [vmem:[#allocation22_spill] sm:$0xff] }
 0x708   : > { %3693 = vmatmul.mubr.msk.bf16.gmra.mrb[112].mxu1 %vm1629_vm6, %v2350_v19  ;;  %v5385_v19 = vld [vmem:[#allocation21_spill] sm:$0xff] }
 0x709   : > { %3755 = vmatprep.mubr.msk.f32.mxu1 %vm2635_vm8, %v2563_v14 }
 0x710   : > { %3756 = vmatmul.mubr.msk.f32.vlgmr.msra.gmra.mrb[30].mxu1 %vm2635_vm8, %v5127_v23 }
 0x711   : > { %3770 = vmatprep.mubr.msk.bf16.mxu1 %vm4065_vm5, %v5363_v15 }
 0x7ab   : > { %v2422_v12 = vpop.f32.mrb[88].mxu1 }
 0x7ac   : > { %2491 = vrot.lane.b32.xlu0 %v2422_v12, %s4067_s5  ;;  %v3670_v3 = vpop.f32.mrb[89].mxu1 }
 0x7ad   : > { %v2425_v16 = vpop.f32.mrb[90].mxu1 }
 0x7ae   : > { %v3671_v56 = vpop.f32.mrb[91].mxu1 }
 0x7af   : > { %v5386_v56 = vld [vmem:[#allocation24_spill] sm:$0xff] }
 0x7b0   : > { %2493 = vrot.lane.b32.xlu0 %v2425_v16, %s4067_s5 }
 0x7b3   : > { %v2430_v8 = vpop.f32.mrb[92].mxu1 }
 0x7b4   : > { %2495 = vrot.lane.b32.xlu0 %v2430_v8, %s4067_s5  ;;  %v3674_v42 = vpop.f32.mrb[93].mxu1 }
 0x7b5   : > { %v2433_v20 = vpop.f32.mrb[94].mxu1  ;;  %v5387_v42 = vld [vmem:[#allocation23_spill] sm:$0xff] }
 0x7b6   : > { %v3675_v61 = vpop.f32.mrb[95].mxu1 }
 0x7b8   : > { %2497 = vrot.lane.b32.xlu0 %v2433_v20, %s4067_s5 }
 0x7bb   : > { %v2438_v22 = vpop.f32.mrb[96].mxu1 }
 0x7bc   : > { %2499 = vrot.lane.b32.xlu0 %v2438_v22, %s4067_s5  ;;  %v3678_v30 = vpop.f32.mrb[97].mxu1 }
 0x7bd   : > { %v2441_v46 = vpop.f32.mrb[98].mxu1  ;;  %v3963_v30 = vld [vmem:[%s5287_s15] sm:$0xff]  }
 0x7be   : > { %v3679_v4 = vpop.f32.mrb[99].mxu1  ;;  %3767 = vmatpush3.bf16.msra.mxu1 %v3963_v30 }
 0x7bf   : > { %3768 = vmatprep.subr.bf16.mxu1 %v5363_v15  ;;  %v5388_v4 = vld [vmem:[#allocation26_spill] sm:$0xff] }
 0x7c0   : > { %2501 = vrot.lane.b32.xlu0 %v2441_v46, %s4067_s5 }
 0x7c3   : > { %v2446_v24 = vpop.f32.mrb[100].mxu1 }
 0x7c4   : > { %2503 = vrot.lane.b32.xlu0 %v2446_v24, %s4067_s5  ;;  %v3682_v63 = vpop.f32.mrb[101].mxu1 }
 0x7c5   : > { %v2449_v40 = vpop.f32.mrb[102].mxu1  ;;  %v5389_v63 = vld [vmem:[#allocation25_spill] sm:$0xff] }
 0x7c6   : > { %v3683_v48 = vpop.f32.mrb[103].mxu1 }
 0x7c8   : > { %2505 = vrot.lane.b32.xlu0 %v2449_v40, %s4067_s5 }
 0x7cb   : > { %v2454_v35 = vpop.f32.mrb[104].mxu1 }
 0x7cc   : > { %2507 = vrot.lane.b32.xlu0 %v2454_v35, %s4067_s5  ;;  %v3686_v47 = vpop.f32.mrb[105].mxu1  ;;  %v3965_v35 = vld [vmem:[%s5287_s15 + $0x8] sm:$0xff]  }
 0x7cd   : > { %v2457_v18 = vpop.f32.mrb[106].mxu1  ;;  %3769 = vmatpush3.bf16.msra.mxu1 %v3965_v35 }
 0x7ce   : > { %v3687_v62 = vpop.f32.mrb[107].mxu1 }
 0x7d0   : > { %2509 = vrot.lane.b32.xlu0 %v2457_v18, %s4067_s5 }
 0x7d3   : > { %v2462_v41 = vpop.f32.mrb[108].mxu1 }
 0x7d4   : > { %2511 = vrot.lane.b32.xlu0 %v2462_v41, %s4067_s5  ;;  %v3690_v26 = vpop.f32.mrb[109].mxu1  ;;  %v5390_v41 = vld [vmem:[#allocation11_spill] sm:$0xff] }
 0x7d5   : > { %v2465_v44 = vpop.f32.mrb[110].mxu1  ;;  %3771 = vmatmul.mubr.msk.bf16.vlgmr.msra.gmra.mrb[116].mxu1 %vm1629_vm6, %v5390_v41  ;;  %v2792_v26 = vld [vmem:[%s5391_s1] sm:$0xff]  ;;  %s3034_s1 = sshll.u32 %s623_s30, 4  ;;  %s5228_s1 = int_to_ptr.vmem [resolvable:$true] %s3034_s1 }
 0x7d6   : > { %v3691_v34 = vpop.f32.mrb[111].mxu1  ;;  %p4005_p0 = scmp.lt.s32.totalorder %s5228_s1, %s4003_s26 }
 0x7d8   : > { %2513 = vrot.lane.b32.xlu0 %v2465_v44, %s4067_s5  ;;  %v4068_v44 = vmov 0  }
 0x7d9   : > { %3949 = vset.pattern.permute.xlu1 %v4068_v44  ;;  %3950 = vset.pattern.permute.xlu0 %v4068_v44 }
 0x7da   : > { %2795 = vperm.xlu1 %3949, %v2792_v26   ;;  %v3997_v26 = vld [vmem:[%s4243_s21 + $0x8] sm:$0xff] }
 0x7db   : > { %v2470_v39 = vpop.f32.mrb[112].mxu1 }
 0x7dc   : > { %2515 = vrot.lane.b32.xlu0 %v2470_v39, %s4067_s5  ;;  %v3694_v55 = vpop.f32.mrb[113].mxu1 }
 0x7dd   : > { %v2473_v9 = vpop.f32.mrb[114].mxu1 }
 0x7de   : > { %v3695_v57 = vpop.f32.mrb[115].mxu1 }
 0x7e0   : > { %2517 = vrot.lane.b32.xlu0 %v2473_v9, %s4067_s5 }
 0x7e3   : > { %v5171_v48 = vpop.f32.mrb[30].mxu1 }
 0x7e4   : > { %v5176_v47 = vpop.f32.mrb[31].mxu1 }
 0x7e5   : > { %v2815_v62 = vpack.c.bf16 %v5171_v48, %v5176_v47  ;;  %v3996_v48 = vld [vmem:[%s4243_s21] sm:$0xff]  ;;  %s3998_s21 = scalar_lea.vmem %s5228_s1, 256 }
 0x7e6   : > { %p3999_p11 = scmp.ne.s32.totalorder %s5228_s1, %s3998_s21 }
 0x7e8   : > { %p4000_p12 = pnand %p3999_p11, %p4215_p5 }
 0x7ea   : > { %p4001_p13 = pneg %p4000_p12 }
 0x81e   : > { %v2492_v45 = vpop.permute.xlu0 %2491 }
 0x81f   : > { %v2533_v27 = vmul.f32 %v2492_v45, %v5375_v49 }
 0x822   : > { %v2494_v43 = vpop.permute.xlu0 %2493 }
 0x823   : > { %v2534_v37 = vmul.f32 %v2494_v43, %v5376_v36 }
 0x825   : > { %v3914_v11 = vpack.i.bf16 %v2534_v37, %v2533_v27 }
 0x826   : > { %v2496_v5 = vpop.permute.xlu0 %2495 }
 0x827   : > { %3915 = vrot.lane.b32.xlu0 %v3914_v11, %s5377_s8  ;;  %v2535_v31 = vmul.f32 %v2496_v5, %v5378_v52 }
 0x82a   : > { %v2498_v32 = vpop.permute.xlu0 %2497 }
 0x82b   : > { %v2536_v28 = vmul.f32 %v2498_v32, %v5379_v2 }
 0x82d   : > { %v3919_v21 = vpack.i.bf16 %v2536_v28, %v2535_v31 }
 0x82e   : > { %v2500_v33 = vpop.permute.xlu0 %2499 }
 0x82f   : > { %3920 = vrot.lane.b32.xlu0 %v3919_v21, %s5377_s8  ;;  %v2537_v17 = vmul.f32 %v2500_v33, %v5380_v53 }
 0x832   : > { %v2502_v60 = vpop.permute.xlu0 %2501 }
 0x833   : > { %v2538_v51 = vmul.f32 %v2502_v60, %v5381_v38 }
 0x835   : > { %v3924_v29 = vpack.i.bf16 %v2538_v51, %v2537_v17 }
 0x836   : > { %v2504_v25 = vpop.permute.xlu0 %2503 }
 0x837   : > { %3925 = vrot.lane.b32.xlu0 %v3924_v29, %s5377_s8  ;;  %v2539_v0 = vmul.f32 %v2504_v25, %v5382_v50  ;;  %v3962_v50 = vld [vmem:[%s5288_s16] sm:$0xff]  }
 0x83a   : > { %v2506_v59 = vpop.permute.xlu0 %2505 }
 0x83b   : > { %v2540_v54 = vmul.f32 %v2506_v59, %v5383_v7 }
 0x83d   : > { %v3929_v1 = vpack.i.bf16 %v2540_v54, %v2539_v0  ;;  %v3964_v0 = vld [vmem:[%s5288_s16 + $0x8] sm:$0xff]  }
 0x83e   : > { %v2508_v6 = vpop.permute.xlu0 %2507 }
 0x83f   : > { %3930 = vrot.lane.b32.xlu0 %v3929_v1, %s5377_s8  ;;  %v2541_v10 = vmul.f32 %v2508_v6, %v5384_v58  ;;  %v3966_v6 = vld [vmem:[%s5290_s18] sm:$0xff]  }
 0x842   : > { %v2510_v13 = vpop.permute.xlu0 %2509 }
 0x843   : > { %v2542_v14 = vmul.f32 %v2510_v13, %v5385_v19  ;;  %v3967_v13 = vld [vmem:[%s5290_s18 + $0x8] sm:$0xff]  }
 0x845   : > { %v3934_v12 = vpack.i.bf16 %v2542_v14, %v2541_v10 }
 0x846   : > { %v2512_v3 = vpop.permute.xlu0 %2511 }
 0x847   : > { %3935 = vrot.lane.b32.xlu0 %v3934_v12, %s5377_s8  ;;  %v2543_v8 = vmul.f32 %v2512_v3, %v5386_v56 }
 0x84a   : > { %v2514_v16 = vpop.permute.xlu0 %2513 }
 0x84b   : > { %v2544_v20 = vmul.f32 %v2514_v16, %v5387_v42  ;;  %v3225_v16 = vld [vmem:[%s5289_s17] ss:$0 sm:$0xff] }
 0x84d   : > { %v3939_v61 = vpack.i.bf16 %v2544_v20, %v2543_v8 }
 0x84e   : > { %v2516_v22 = vpop.permute.xlu0 %2515 }
 0x84f   : > { %3940 = vrot.lane.b32.xlu0 %v3939_v61, %s5377_s8  ;;  %v2545_v24 = vmul.f32 %v2516_v22, %v5388_v4 }
 0x852   : > { %v2518_v46 = vpop.permute.xlu0 %2517 }
 0x853   : > { %v2546_v40 = vmul.f32 %v2518_v46, %v5389_v63 }
 0x855   : > { %v3944_v18 = vpack.i.bf16 %v2546_v40, %v2545_v24  ;;  %v3229_v40 = vld [vmem:[%s5291_s19] ss:$0 sm:$0xff] }
 0x857   : > { %3945 = vrot.lane.b32.xlu0 %v3944_v18, %s5377_s8 }
 0x859   : > { %v2796_v58 = vpop.permute.xlu1 %2795 }
 0x899   : > { %v3916_v34 = vpop.permute.xlu0 %3915 }
 0x89a   : > { %v3918_v39 = vunpack.i.h.bf16 %v3916_v34  ;;  %v3917_v55 = vunpack.i.l.bf16 %v3916_v34 }
 0x89c   : > { %v3808_v9 = vpack.c.bf16 %v3918_v39, %v3917_v55 }
 0x89e   : > { %3809 = vmatprep.subr.bf16.mxu0 %v3808_v9 }
 0x89f   : > { %3811 = vmatpush3.bf16.msra.mxu0 %v3808_v9 }
 0x8a1   : > { %v3921_v57 = vpop.permute.xlu0 %3920 }
 0x8a2   : > { %v3923_v45 = vunpack.i.h.bf16 %v3921_v57  ;;  %v3922_v43 = vunpack.i.l.bf16 %v3921_v57 }
 0x8a4   : > { %v3812_v49 = vpack.c.bf16 %v3923_v45, %v3922_v43 }
 0x8a6   : > { %3813 = vmatprep.subr.bf16.mxu0 %v3812_v49 }
 0x8a7   : > { %3815 = vmatpush3.bf16.msra.mxu0 %v3812_v49 }
 0x8a8   : > { %v2925_v7 = vpop.f32.mrb[116].mxu1 }
 0x8a9   : > { %v3926_v27 = vpop.permute.xlu0 %3925 }
 0x8aa   : > { %v3928_v36 = vunpack.i.h.bf16 %v3926_v27  ;;  %v3927_v37 = vunpack.i.l.bf16 %v3926_v27 }
 0x8ac   : > { %v3816_v11 = vpack.c.bf16 %v3928_v36, %v3927_v37 }
 0x8ae   : > { %3817 = vmatprep.subr.bf16.mxu0 %v3816_v11 }
 0x8af   : > { %3819 = vmatpush3.bf16.msra.mxu0 %v3816_v11 }
 0x8b1   : > { %v3931_v5 = vpop.permute.xlu0 %3930 }
 0x8b2   : > { %v3933_v32 = vunpack.i.h.bf16 %v3931_v5  ;;  %v3932_v52 = vunpack.i.l.bf16 %v3931_v5 }
 0x8b4   : > { %v3820_v31 = vpack.c.bf16 %v3933_v32, %v3932_v52 }
 0x8b6   : > { %3821 = vmatprep.subr.bf16.mxu0 %v3820_v31 }
 0x8b7   : > { %3823 = vmatpush3.bf16.msra.mxu0 %v3820_v31 }
 0x8b9   : > { %v3936_v2 = vpop.permute.xlu0 %3935 }
 0x8ba   : > { %v3938_v28 = vunpack.i.h.bf16 %v3936_v2  ;;  %v3937_v21 = vunpack.i.l.bf16 %v3936_v2 }
 0x8bc   : > { %v3824_v33 = vpack.c.bf16 %v3938_v28, %v3937_v21 }
 0x8be   : > { %3825 = vmatprep.subr.bf16.mxu0 %v3824_v33 }
 0x8bf   : > { %3827 = vmatpush3.bf16.msra.mxu0 %v3824_v33 }
 0x8c1   : > { %v3941_v60 = vpop.permute.xlu0 %3940 }
 0x8c2   : > { %v3943_v53 = vunpack.i.h.bf16 %v3941_v60  ;;  %v3942_v17 = vunpack.i.l.bf16 %v3941_v60 }
 0x8c4   : > { %v3828_v38 = vpack.c.bf16 %v3943_v53, %v3942_v17 }
 0x8c6   : > { %3829 = vmatprep.subr.bf16.mxu0 %v3828_v38 }
 0x8c7   : > { %3831 = vmatpush3.bf16.msra.mxu0 %v3828_v38 }
 0x8c9   : > { %v3946_v51 = vpop.permute.xlu0 %3945 }
 0x8ca   : > { %v3948_v29 = vunpack.i.h.bf16 %v3946_v51  ;;  %v3947_v25 = vunpack.i.l.bf16 %v3946_v51 }
 0x8cc   : > { %v3832_v59 = vpack.c.bf16 %v3948_v29, %v3947_v25 }
 0x8ce   : > { %3833 = vmatprep.subr.bf16.mxu0 %v3832_v59 }
 0x8cf   : > { %3835 = vmatpush3.bf16.msra.mxu0 %v3832_v59 }
 0x8d0   : > { %3758 = vmatprep.subr.bf16.mxu0 %v5363_v15 }
 0x8d2   : > { %3725 = vmatmul.mubr.msk.f32.vlgmr.msra.gmra.mrb[26].mxu0 %vm2635_vm8, %v5127_v23  ;;  %v3772_v23 = vpop.f32.mrb[117].mxu1 }
 0x8d3   : > { %3759 = vmatpush3.bf16.msra.mxu0 %v3962_v50  ;;  %3762 = vmatprep.mubr.msk.bf16.mxu0 %vm4065_vm5, %v5363_v15  ;;  %v2928_v54 = vpop.f32.mrb[118].mxu1 }
 0x8d4   : > { %3760 = vmatprep.subr.bf16.mxu0 %v5363_v15  ;;  %v3773_v1 = vpop.f32.mrb[119].mxu1 }
 0x8d7   : > { %3761 = vmatpush3.bf16.msra.mxu0 %v3964_v0 }
 0x8d8   : > { %3774 = vmatprep.subr.bf16.mxu0 %v5363_v15 }
 0x8da   : > { %3763 = vmatmul.mubr.msk.bf16.vlgmr.msra.gmra.mrb[112].mxu0 %vm1629_vm6, %v2815_v62 }
 0x8db   : > { %3778 = vmatprep.mubr.msk.bf16.mxu0 %vm4065_vm5, %v5363_v15  ;;  %3775 = vmatpush3.bf16.msra.mxu0 %v3966_v6 }
 0x8dc   : > { %3776 = vmatprep.subr.bf16.mxu0 %v5363_v15 }
 0x8df   : > { %3777 = vmatpush3.bf16.msra.mxu0 %v3967_v13 }
 0x9a5   : > { %v3726_v10 = vpop.f32.mrb[26].mxu0 }
 0x9a6   : > { %v2708_v19 = vpop.f32.mrb[27].mxu0  ;;  %v2799_v12 = vmul.f32 %v3726_v10, %v2796_v58 }
 0x9a7   : > { %v2798_v14 = vmul.f32 %v2796_v58, %v2708_v19 }
 0x9a9   : > { %2802 = vrot.lane.b32.xlu0 %v2798_v14, %s4067_s5 }
 0x9ad   : > { %v2869_v3 = vpop.f32.mrb[112].mxu0  ;;  %2804 = vrot.lane.b32.xlu0 %v2799_v12, %s4067_s5  ;;  %s5226_s5 = scalar_lea.hbm %s5292_s20, %s3235_s23  ;;  %s4004_s23 = scalar_lea.vmem %s4003_s26, 512 }
 0x9ae   : > { %v2926_v15 = vadd.f32 %v2925_v7, %v2869_v3  ;;  %v3764_v56 = vpop.f32.mrb[113].mxu0  ;;  %p4006_p1 = scmp.lt.s32.totalorder %s4004_s23, %s3998_s21 }
 0x9af   : > { %v2872_v8 = vpop.f32.mrb[114].mxu0 }
 0x9b0   : > { %v2939_v42 = vadd.f32 %v3225_v16, %v2926_v15  ;;  %v2929_v20 = vadd.f32 %v2928_v54, %v2872_v8  ;;  %v3765_v61 = vpop.f32.mrb[115].mxu0  ;;  %p4007_p2 = por %p4006_p1, %p4005_p0 }
 0x9b2   : > { %v2940_v22 = vadd.f32 %v3225_v16, %v2929_v20  ;;  %v2941_v30 = vmax.f32 %v2939_v42, 0.0  ;;  %p4008_p3 = pnand %p4007_p2, %p4001_p13 }
 0x9b4   : > { %v2942_v46 = vmax.f32 %v2940_v22, 0.0 }
 0x9b6   : > { %v2943_v4 = vpack.c.bf16 %v2942_v46, %v2941_v30 }
 0x9b8   : > { %3779 = vmatmul.mubr.msk.bf16.vlgmr.msra.gmra.mrb[116].mxu0 %vm1629_vm6, %v2943_v4 }
 0xa1b   : > { %v2803_v24 = vpop.permute.xlu0 %2802 }
 0xa1c   : > { %v2808_v39 = vadd.f32 %v3996_v48, %v2803_v24 }
 0xa1f   : > { %v2805_v62 = vpop.permute.xlu0 %2804 }
 0xa20   : > { %v2809_v9 = vadd.f32 %v3997_v26, %v2805_v62 }
 0xa8b   : > { %v2997_v63 = vpop.f32.mrb[116].mxu0 }
 0xa8c   : > { %v3004_v35 = vadd.f32 %v3996_v48, %v2997_v63  ;;  %v3780_v47 = vpop.f32.mrb[117].mxu0 }
 0xa8d   : > { %v3000_v18 = vpop.f32.mrb[118].mxu0 }
 0xa8e   : > { %v3013_v41 = vadd.f32 %v3229_v40, %v3004_v35  ;;  %v3005_v44 = vadd.f32 %v3997_v26, %v3000_v18  ;;  %v3781_v34 = vpop.f32.mrb[119].mxu0 }
 0xa90   : > { %3015 = vst.msk [vmem:[%s623_s30] sm:$0xff] %vm1629_vm6, %v3013_v41  ;;  %v3014_v55 = vadd.f32 %v3229_v40, %v3005_v44 }
 0xa91   : > { %3018 = vst.msk [vmem:[%s623_s30] sm:$0xff] %vm3017_vm9, %v2808_v39 }
 0xa92   : > { %3016 = vst.msk [vmem:[%s623_s30 + $0x8] sm:$0xff] %vm1629_vm6, %v3014_v55 }
 0xa93   : > { %3019 = vst.msk [vmem:[%s623_s30 + $0x8] sm:$0xff] %vm3017_vm9, %v2809_v9 }
 0xa94   : > { %4011 = shalt.err (!%p4008_p3)
}
 0xa95   : > { %s4012_s29 = scalar_lea.hbm %s5226_s5, 256  ;;  %s4016_s0 = scalar_lea.hbm %s5292_s20, 512 }
 0xa96   : > { %p4013_p4 = scmp.ne.s32.totalorder %s5226_s5, %s4012_s29  ;;  %p4017_p9 = scmp.lt.u32.totalorder %s5226_s5, %s5292_s20 }
 0xa97   : > { %p4018_p10 = scmp.lt.u32.totalorder %s4016_s0, %s4012_s29  ;;  %p4020_p12 = scmp.lt.u32.totalorder %s4012_s29, %s5226_s5 }
 0xa98   : > { %p4014_p7 = pnand %p4013_p4, %p4215_p5 }
 0xa99   : > { %p4019_p11 = por %p4018_p10, %p4017_p9 }
 0xa9a   : > { %p4015_p8 = pneg %p4014_p7 }
 0xa9b   : > { %p4021_p13 = por %p4020_p12, %p4019_p11 }
 0xa9d   : > { %p4022_p0 = pnand %p4021_p13, %p4015_p8 }
 0xa9f   : > { %4025 = shalt.err (!%p4022_p0)
}
 0xaa0   : > { %s4070_s21 = smov 128   ;;  %s4071_s23 = smov 8  }
 0xaa1   : > { %3866 = dma.vmem_to_hbm [thread:$0]  (%p4215_p5), %s5228_s1, 256, %s5226_s5, %s5231_s2, %s4070_s21, %s4070_s21, %s4071_s23  }
 0xaa2 PF: > { %s5392_s30 = sld [smem:[#allocation5_spill]]  ;;  %p3872_p1 = scmp.ge.s32.totalorder %s4060_s24, 2 }
 0xaa4   : > { %p3869_p2 = pnand %p3872_p1, %p4219_p6 }
 0xaa8   : > { %s3049_s25 = sand.u32 1, %s5392_s30  }
 0xaa9   : > { %s3050_s29 = scalar_lea.sflag [#allocation3], %s3049_s25 }
 0xaaa   : > { %4043 = dma.done.wait (!%p3869_p2), %s3050_s29, 256  }
 0xaab   : > { %4045 = vsyncadd (!%p3869_p2), %s3050_s29, 4294967040  ;;  %s5394_s24 = sld [smem:[#allocation7_spill]]  ;;  %s5395_s0 = sld [smem:[#allocation6_spill]] }
 0xaac   : > { %s5396_s23 = sld [smem:[#allocation8_spill]]  ;;  %s5397_s1 = smov %s4052_s22 }
 0xab1   : > { %p30_p3 = scmp.ge.s32.totalorder %s5394_s24, 4   ;;  %s5398_s22 = smov %s5395_s0 }
 0xab3   :  { %32 = sbr.rel (!%p30_p3) target bundleno = 11 (0xb), region = 135 }
 0xaba   :  { %3055 = vsyncpa [#allocation3], 1 }
 0xabb   :  { %3057 = vsyncpa [#allocation3 + $0x1], 1 }

</bundles_post_ra>
